<compile_context>
chip_gen: v7x
topology: tpu7x:2x2x1
jax: 0.10.0
libtpu: 0.0.40
codegen_flags: <defaults>
</compile_context>

<pallas_src>
import functools
import math

import jax
import jax.numpy as jnp
from jax import lax
from jax.experimental import pallas as pl
from jax.experimental.pallas import tpu as pltpu


def _round_up(n, m):
    return ((n + m - 1) // m) * m


# -----------------------------------------------------------------------------
# Group machinery (pure-JAX glue, runs once per call on tiny weight tensors)
# -----------------------------------------------------------------------------
def make_transformed_weight(weight, out_repr, in_repr):
    """weight: (Cout, Cin, R_in, kh, kw) -> (Cout*R_out, Cin*R_in, kh, kw)."""
    Cout, Cin, R_in, kh, kw = weight.shape
    out_blocks = []
    for out_idx in range(out_repr):
        row = []
        for in_idx in range(in_repr):
            g = (in_idx - out_idx) % in_repr          # g_indices[out_idx, in_idx]
            w = weight[:, :, g]                        # (Cout, Cin, kh, kw)
            w = jnp.rot90(w, k=out_idx, axes=(-2, -1)) # group.transforms[out_idx]
            row.append(w)
        out_blocks.append(jnp.stack(row, axis=2))      # (Cout, Cin, R_in, kh, kw)
    tw = jnp.stack(out_blocks, axis=1)                 # (Cout, R_out, Cin, R_in, kh, kw)
    return tw.reshape(Cout * out_repr, Cin * in_repr, kh, kw)


# -----------------------------------------------------------------------------
# Pallas kernel: grid = (batch, H_out row-tiles). Conv done as kh*kw shifted
# 128x128x128 matmuls accumulated in a register-resident f32 value.
# -----------------------------------------------------------------------------
def gconv_kernel(x_ref, w_ref, b_ref, o_ref, *, kh, kw, th):
    # x_ref : (1, H_pad, W_pad, Ci_pad)   bf16  (full padded plane, this batch)
    # w_ref : (kh, kw, Ci_pad, Co_pad)    bf16
    # b_ref : (1, Co_pad)                 f32
    # o_ref : (1, th, W_out, Co_pad)      f32
    W_out = o_ref.shape[2]
    Co = o_ref.shape[3]
    h0 = pl.multiple_of(pl.program_id(1) * th, th)

    # Bias folded into the register accumulator (no VMEM scratch, no epilogue add).
    acc = jnp.broadcast_to(b_ref[...], (th * W_out, Co))
    for dy in range(kh):
        # Leading-dim (H) dynamic slice: address arithmetic only, no relayout.
        rows = x_ref[0, pl.ds(h0 + dy, th), :, :]              # (th, W_pad, Ci_pad)
        for dx in range(kw):
            patch = rows[:, dx:dx + W_out, :].reshape(th * W_out, -1)
            acc = acc + jnp.dot(patch, w_ref[dy, dx],
                                preferred_element_type=jnp.float32)
    o_ref[...] = acc.reshape(1, th, W_out, Co).astype(o_ref.dtype)


def gconv2d_pallas(x, weight, bias, *, out_repr, in_repr, padding=1,
                   row_tile=8, compute_dtype=jnp.bfloat16):
    """x: (B, C, R_in, H, W) -> (B, Cout, R_out, H_out, W_out)."""
    B, C, R_in, H, W = x.shape

    tw = make_transformed_weight(weight, out_repr, in_repr)   # (CoRo, CiRi, kh, kw)
    CoRo, CiRi, kh, kw = tw.shape
    tb = jnp.repeat(bias[:, None], out_repr, axis=1).reshape(-1)   # (CoRo,)

    # Lane-dense channel padding (multiple of 128 on both the contraction and
    # output channel axes).
    Ci_pad = _round_up(CiRi, 128)
    Co_pad = _round_up(CoRo, 128)

    # NCHW (fused group) -> NHWC, spatial zero-pad + channel zero-pad, bf16 cast.
    x2 = x.reshape(B, C * R_in, H, W).transpose(0, 2, 3, 1)
    x2 = jnp.pad(x2, ((0, 0), (padding, padding), (padding, padding),
                      (0, Ci_pad - CiRi))).astype(compute_dtype)
    H_pad, W_pad = H + 2 * padding, W + 2 * padding
    H_out, W_out = H_pad - kh + 1, W_pad - kw + 1

    w_hw = tw.transpose(2, 3, 1, 0)                            # (kh, kw, CiRi, CoRo)
    w_hw = jnp.pad(w_hw, ((0, 0), (0, 0), (0, Ci_pad - CiRi),
                          (0, Co_pad - CoRo))).astype(compute_dtype)
    b2 = jnp.pad(tb, (0, Co_pad - CoRo)).reshape(1, Co_pad).astype(jnp.float32)

    th = row_tile if (H_out % row_tile == 0) else H_out
    n_row_tiles = H_out // th

    kernel = functools.partial(gconv_kernel, kh=kh, kw=kw, th=th)
    out = pl.pallas_call(
        kernel,
        out_shape=jax.ShapeDtypeStruct((B, H_out, W_out, Co_pad), jnp.float32),
        grid_spec=pltpu.PrefetchScalarGridSpec(
            num_scalar_prefetch=0,
            grid=(B, n_row_tiles),
            in_specs=[
                pl.BlockSpec((1, H_pad, W_pad, Ci_pad), lambda b, r: (b, 0, 0, 0)),
                pl.BlockSpec((kh, kw, Ci_pad, Co_pad), lambda b, r: (0, 0, 0, 0)),
                pl.BlockSpec((1, Co_pad), lambda b, r: (0, 0)),
            ],
            out_specs=pl.BlockSpec((1, th, W_out, Co_pad),
                                   lambda b, r: (b, r, 0, 0)),
        ),
        compiler_params=pltpu.CompilerParams(
            dimension_semantics=("parallel", "parallel"),
            vmem_limit_bytes=32 * 1024 * 1024),
    )(x2, w_hw, b2)

    out = out[..., :CoRo].transpose(0, 3, 1, 2)                # (B, CoRo, H_out, W_out)
    Cout = CoRo // out_repr
    return out.reshape(B, Cout, out_repr, H_out, W_out)


# -----------------------------------------------------------------------------
# Pure-JAX reference (mirrors the PyTorch forward) for correctness check.
# Inputs/weights are quantized to the same compute dtype as the kernel so the
# comparison isolates the conv math (f32 accumulation in both paths).
# -----------------------------------------------------------------------------
def gconv2d_ref(x, weight, bias, *, out_repr, in_repr, padding=1,
                compute_dtype=jnp.bfloat16):
    B, C, R_in, H, W = x.shape
    tw = make_transformed_weight(weight, out_repr, in_repr)
    tb = jnp.repeat(bias[:, None], out_repr, axis=1).reshape(-1)
    x2 = x.reshape(B, C * R_in, H, W)
    if compute_dtype is not None:
        x2 = x2.astype(compute_dtype).astype(jnp.float32)
        tw = tw.astype(compute_dtype).astype(jnp.float32)
    out = lax.conv_general_dilated(
        x2, tw, window_strides=(1, 1),
        padding=[(padding, padding), (padding, padding)],
        dimension_numbers=("NCHW", "OIHW", "NCHW"),
        precision=lax.Precision.HIGHEST)
    out = out + tb[None, :, None, None]
    Cout = tw.shape[0] // out_repr
    return out.reshape(B, Cout, out_repr, out.shape[2], out.shape[3])


if __name__ == "__main__":
    # Small config consistent with the module: C4 group regular representation.
    B, Cin, Cout = 2, 4, 4
    R_in = R_out = 4
    H = W = 16
    K = 3
    PAD = 1

    key = jax.random.PRNGKey(0)
    kx, kw_, kb = jax.random.split(key, 3)

    # Deterministic init mirroring reset_parameters():
    # fan_in computed on weight[:, :, 0] of shape (Cout, Cin, K, K) -> Cin*K*K
    fan_in = Cin * K * K
    w_bound = math.sqrt(6.0 / fan_in)
    b_bound = 1.0 / math.sqrt(fan_in)
    weight = jax.random.uniform(kw_, (Cout, Cin, R_in, K, K),
                                minval=-w_bound, maxval=w_bound,
                                dtype=jnp.float32)
    bias = jax.random.uniform(kb, (Cout,), minval=-b_bound, maxval=b_bound,
                              dtype=jnp.float32)

    x = jax.random.normal(kx, (B, Cin, R_in, H, W), dtype=jnp.float32)

    out = gconv2d_pallas(x, weight, bias, out_repr=R_out, in_repr=R_in,
                         padding=PAD)
    out = jax.block_until_ready(out)

    ref = gconv2d_ref(x, weight, bias, out_repr=R_out, in_repr=R_in,
                      padding=PAD)
    ref = jax.block_until_ready(ref)

    assert out.shape == (B, Cout, R_out, H, W), out.shape
    err = float(jnp.max(jnp.abs(out - ref)))
    assert jnp.allclose(out, ref, rtol=1e-3, atol=1e-3), err
    print("KERNEL_OK")
</pallas_src>

<mosaic_0001>
module attributes {stable_mosaic.version = 11 : i64} {
  func.func @gconv_kernel(%arg0: i32, %arg1: i32, %arg2: memref<1x18x18x128xbf16, #tpu.memory_space<vmem>>, %arg3: memref<3x3x128x128xbf16, #tpu.memory_space<vmem>>, %arg4: memref<1x128xf32, #tpu.memory_space<vmem>>, %arg5: memref<1x8x16x128xf32, #tpu.memory_space<vmem>>) attributes {dimension_semantics = [#tpu.dimension_semantics<parallel>, #tpu.dimension_semantics<parallel>], iteration_bounds = array<i64: 2, 2>, scalar_prefetch = 0 : i64, scratch_operands = 0 : i64, tpu.core_type = #tpu.core_type<tc>, window_params = [{transform_indices = @transform_0, window_bounds = array<i64: 1, 18, 18, 128>}, {pipeline_mode = #tpu.pipeline_mode<synchronous>, transform_indices = @transform_1, window_bounds = array<i64: 3, 3, 128, 128>}, {pipeline_mode = #tpu.pipeline_mode<synchronous>, transform_indices = @transform_2, window_bounds = array<i64: 1, 128>}, {transform_indices = @transform_3, window_bounds = array<i64: 1, 8, 16, 128>}]} {
    %c8_i32 = arith.constant 8 : i32
    %0 = arith.muli %arg1, %c8_i32 : i32
    %1 = tpu.assume_multiple %0, 8 : i32
    %c0 = arith.constant 0 : index
    %c0_0 = arith.constant 0 : index
    %2 = vector.load %arg4[%c0, %c0_0] : memref<1x128xf32, #tpu.memory_space<vmem>>, vector<1x128xf32>
    %3 = vector.shape_cast %2 : vector<1x128xf32> to vector<1x128xf32>
    %4 = vector.broadcast %3 : vector<1x128xf32> to vector<128x128xf32>
    %c0_i32 = arith.constant 0 : i32
    %5 = arith.addi %1, %c0_i32 : i32
    %c0_1 = arith.constant 0 : index
    %6 = arith.index_cast %5 : i32 to index
    %c0_2 = arith.constant 0 : index
    %c0_3 = arith.constant 0 : index
    %7 = vector.load %arg2[%c0_1, %6, %c0_2, %c0_3] : memref<1x18x18x128xbf16, #tpu.memory_space<vmem>>, vector<1x8x18x128xbf16>
    %8 = vector.shape_cast %7 : vector<1x8x18x128xbf16> to vector<8x18x128xbf16>
    %9 = vector.extract_strided_slice %8 {offsets = [0, 0, 0], sizes = [8, 16, 128], strides = [1, 1, 1]} : vector<8x18x128xbf16> to vector<8x16x128xbf16>
    %10 = vector.shape_cast %9 : vector<8x16x128xbf16> to vector<128x128xbf16>
    %c0_4 = arith.constant 0 : index
    %c0_5 = arith.constant 0 : index
    %c0_6 = arith.constant 0 : index
    %c0_7 = arith.constant 0 : index
    %11 = vector.load %arg3[%c0_4, %c0_5, %c0_6, %c0_7] : memref<3x3x128x128xbf16, #tpu.memory_space<vmem>>, vector<1x1x128x128xbf16>
    %12 = vector.shape_cast %11 : vector<1x1x128x128xbf16> to vector<128x128xbf16>
    %cst = arith.constant dense<0.000000e+00> : vector<128x128xf32>
    %13 = tpu.matmul %10, %12, %cst {dimension_numbers = #tpu.dot_dimension_numbers<[1], [0], [0], [1], [0, 0, 1, 1], [], []>} : vector<128x128xbf16>, vector<128x128xbf16>, vector<128x128xf32> -> vector<128x128xf32>
    %14 = arith.addf %4, %13 : vector<128x128xf32>
    %15 = vector.extract_strided_slice %8 {offsets = [0, 1, 0], sizes = [8, 16, 128], strides = [1, 1, 1]} : vector<8x18x128xbf16> to vector<8x16x128xbf16>
    %16 = vector.shape_cast %15 : vector<8x16x128xbf16> to vector<128x128xbf16>
    %c0_8 = arith.constant 0 : index
    %c1 = arith.constant 1 : index
    %c0_9 = arith.constant 0 : index
    %c0_10 = arith.constant 0 : index
    %17 = vector.load %arg3[%c0_8, %c1, %c0_9, %c0_10] : memref<3x3x128x128xbf16, #tpu.memory_space<vmem>>, vector<1x1x128x128xbf16>
    %18 = vector.shape_cast %17 : vector<1x1x128x128xbf16> to vector<128x128xbf16>
    %cst_11 = arith.constant dense<0.000000e+00> : vector<128x128xf32>
    %19 = tpu.matmul %16, %18, %cst_11 {dimension_numbers = #tpu.dot_dimension_numbers<[1], [0], [0], [1], [0, 0, 1, 1], [], []>} : vector<128x128xbf16>, vector<128x128xbf16>, vector<128x128xf32> -> vector<128x128xf32>
    %20 = arith.addf %14, %19 : vector<128x128xf32>
    %21 = vector.extract_strided_slice %8 {offsets = [0, 2, 0], sizes = [8, 16, 128], strides = [1, 1, 1]} : vector<8x18x128xbf16> to vector<8x16x128xbf16>
    %22 = vector.shape_cast %21 : vector<8x16x128xbf16> to vector<128x128xbf16>
    %c0_12 = arith.constant 0 : index
    %c2 = arith.constant 2 : index
    %c0_13 = arith.constant 0 : index
    %c0_14 = arith.constant 0 : index
    %23 = vector.load %arg3[%c0_12, %c2, %c0_13, %c0_14] : memref<3x3x128x128xbf16, #tpu.memory_space<vmem>>, vector<1x1x128x128xbf16>
    %24 = vector.shape_cast %23 : vector<1x1x128x128xbf16> to vector<128x128xbf16>
    %cst_15 = arith.constant dense<0.000000e+00> : vector<128x128xf32>
    %25 = tpu.matmul %22, %24, %cst_15 {dimension_numbers = #tpu.dot_dimension_numbers<[1], [0], [0], [1], [0, 0, 1, 1], [], []>} : vector<128x128xbf16>, vector<128x128xbf16>, vector<128x128xf32> -> vector<128x128xf32>
    %26 = arith.addf %20, %25 : vector<128x128xf32>
    %c1_i32 = arith.constant 1 : i32
    %27 = arith.addi %1, %c1_i32 : i32
    %c0_16 = arith.constant 0 : index
    %28 = arith.index_cast %27 : i32 to index
    %c0_17 = arith.constant 0 : index
    %c0_18 = arith.constant 0 : index
    %29 = vector.load %arg2[%c0_16, %28, %c0_17, %c0_18] : memref<1x18x18x128xbf16, #tpu.memory_space<vmem>>, vector<1x8x18x128xbf16>
    %30 = vector.shape_cast %29 : vector<1x8x18x128xbf16> to vector<8x18x128xbf16>
    %31 = vector.extract_strided_slice %30 {offsets = [0, 0, 0], sizes = [8, 16, 128], strides = [1, 1, 1]} : vector<8x18x128xbf16> to vector<8x16x128xbf16>
    %32 = vector.shape_cast %31 : vector<8x16x128xbf16> to vector<128x128xbf16>
    %c1_19 = arith.constant 1 : index
    %c0_20 = arith.constant 0 : index
    %c0_21 = arith.constant 0 : index
    %c0_22 = arith.constant 0 : index
    %33 = vector.load %arg3[%c1_19, %c0_20, %c0_21, %c0_22] : memref<3x3x128x128xbf16, #tpu.memory_space<vmem>>, vector<1x1x128x128xbf16>
    %34 = vector.shape_cast %33 : vector<1x1x128x128xbf16> to vector<128x128xbf16>
    %cst_23 = arith.constant dense<0.000000e+00> : vector<128x128xf32>
    %35 = tpu.matmul %32, %34, %cst_23 {dimension_numbers = #tpu.dot_dimension_numbers<[1], [0], [0], [1], [0, 0, 1, 1], [], []>} : vector<128x128xbf16>, vector<128x128xbf16>, vector<128x128xf32> -> vector<128x128xf32>
    %36 = arith.addf %26, %35 : vector<128x128xf32>
    %37 = vector.extract_strided_slice %30 {offsets = [0, 1, 0], sizes = [8, 16, 128], strides = [1, 1, 1]} : vector<8x18x128xbf16> to vector<8x16x128xbf16>
    %38 = vector.shape_cast %37 : vector<8x16x128xbf16> to vector<128x128xbf16>
    %c1_24 = arith.constant 1 : index
    %c1_25 = arith.constant 1 : index
    %c0_26 = arith.constant 0 : index
    %c0_27 = arith.constant 0 : index
    %39 = vector.load %arg3[%c1_24, %c1_25, %c0_26, %c0_27] : memref<3x3x128x128xbf16, #tpu.memory_space<vmem>>, vector<1x1x128x128xbf16>
    %40 = vector.shape_cast %39 : vector<1x1x128x128xbf16> to vector<128x128xbf16>
    %cst_28 = arith.constant dense<0.000000e+00> : vector<128x128xf32>
    %41 = tpu.matmul %38, %40, %cst_28 {dimension_numbers = #tpu.dot_dimension_numbers<[1], [0], [0], [1], [0, 0, 1, 1], [], []>} : vector<128x128xbf16>, vector<128x128xbf16>, vector<128x128xf32> -> vector<128x128xf32>
    %42 = arith.addf %36, %41 : vector<128x128xf32>
    %43 = vector.extract_strided_slice %30 {offsets = [0, 2, 0], sizes = [8, 16, 128], strides = [1, 1, 1]} : vector<8x18x128xbf16> to vector<8x16x128xbf16>
    %44 = vector.shape_cast %43 : vector<8x16x128xbf16> to vector<128x128xbf16>
    %c1_29 = arith.constant 1 : index
    %c2_30 = arith.constant 2 : index
    %c0_31 = arith.constant 0 : index
    %c0_32 = arith.constant 0 : index
    %45 = vector.load %arg3[%c1_29, %c2_30, %c0_31, %c0_32] : memref<3x3x128x128xbf16, #tpu.memory_space<vmem>>, vector<1x1x128x128xbf16>
    %46 = vector.shape_cast %45 : vector<1x1x128x128xbf16> to vector<128x128xbf16>
    %cst_33 = arith.constant dense<0.000000e+00> : vector<128x128xf32>
    %47 = tpu.matmul %44, %46, %cst_33 {dimension_numbers = #tpu.dot_dimension_numbers<[1], [0], [0], [1], [0, 0, 1, 1], [], []>} : vector<128x128xbf16>, vector<128x128xbf16>, vector<128x128xf32> -> vector<128x128xf32>
    %48 = arith.addf %42, %47 : vector<128x128xf32>
    %c2_i32 = arith.constant 2 : i32
    %49 = arith.addi %1, %c2_i32 : i32
    %c0_34 = arith.constant 0 : index
    %50 = arith.index_cast %49 : i32 to index
    %c0_35 = arith.constant 0 : index
    %c0_36 = arith.constant 0 : index
    %51 = vector.load %arg2[%c0_34, %50, %c0_35, %c0_36] : memref<1x18x18x128xbf16, #tpu.memory_space<vmem>>, vector<1x8x18x128xbf16>
    %52 = vector.shape_cast %51 : vector<1x8x18x128xbf16> to vector<8x18x128xbf16>
    %53 = vector.extract_strided_slice %52 {offsets = [0, 0, 0], sizes = [8, 16, 128], strides = [1, 1, 1]} : vector<8x18x128xbf16> to vector<8x16x128xbf16>
    %54 = vector.shape_cast %53 : vector<8x16x128xbf16> to vector<128x128xbf16>
    %c2_37 = arith.constant 2 : index
    %c0_38 = arith.constant 0 : index
    %c0_39 = arith.constant 0 : index
    %c0_40 = arith.constant 0 : index
    %55 = vector.load %arg3[%c2_37, %c0_38, %c0_39, %c0_40] : memref<3x3x128x128xbf16, #tpu.memory_space<vmem>>, vector<1x1x128x128xbf16>
    %56 = vector.shape_cast %55 : vector<1x1x128x128xbf16> to vector<128x128xbf16>
    %cst_41 = arith.constant dense<0.000000e+00> : vector<128x128xf32>
    %57 = tpu.matmul %54, %56, %cst_41 {dimension_numbers = #tpu.dot_dimension_numbers<[1], [0], [0], [1], [0, 0, 1, 1], [], []>} : vector<128x128xbf16>, vector<128x128xbf16>, vector<128x128xf32> -> vector<128x128xf32>
    %58 = arith.addf %48, %57 : vector<128x128xf32>
    %59 = vector.extract_strided_slice %52 {offsets = [0, 1, 0], sizes = [8, 16, 128], strides = [1, 1, 1]} : vector<8x18x128xbf16> to vector<8x16x128xbf16>
    %60 = vector.shape_cast %59 : vector<8x16x128xbf16> to vector<128x128xbf16>
    %c2_42 = arith.constant 2 : index
    %c1_43 = arith.constant 1 : index
    %c0_44 = arith.constant 0 : index
    %c0_45 = arith.constant 0 : index
    %61 = vector.load %arg3[%c2_42, %c1_43, %c0_44, %c0_45] : memref<3x3x128x128xbf16, #tpu.memory_space<vmem>>, vector<1x1x128x128xbf16>
    %62 = vector.shape_cast %61 : vector<1x1x128x128xbf16> to vector<128x128xbf16>
    %cst_46 = arith.constant dense<0.000000e+00> : vector<128x128xf32>
    %63 = tpu.matmul %60, %62, %cst_46 {dimension_numbers = #tpu.dot_dimension_numbers<[1], [0], [0], [1], [0, 0, 1, 1], [], []>} : vector<128x128xbf16>, vector<128x128xbf16>, vector<128x128xf32> -> vector<128x128xf32>
    %64 = arith.addf %58, %63 : vector<128x128xf32>
    %65 = vector.extract_strided_slice %52 {offsets = [0, 2, 0], sizes = [8, 16, 128], strides = [1, 1, 1]} : vector<8x18x128xbf16> to vector<8x16x128xbf16>
    %66 = vector.shape_cast %65 : vector<8x16x128xbf16> to vector<128x128xbf16>
    %c2_47 = arith.constant 2 : index
    %c2_48 = arith.constant 2 : index
    %c0_49 = arith.constant 0 : index
    %c0_50 = arith.constant 0 : index
    %67 = vector.load %arg3[%c2_47, %c2_48, %c0_49, %c0_50] : memref<3x3x128x128xbf16, #tpu.memory_space<vmem>>, vector<1x1x128x128xbf16>
    %68 = vector.shape_cast %67 : vector<1x1x128x128xbf16> to vector<128x128xbf16>
    %cst_51 = arith.constant dense<0.000000e+00> : vector<128x128xf32>
    %69 = tpu.matmul %66, %68, %cst_51 {dimension_numbers = #tpu.dot_dimension_numbers<[1], [0], [0], [1], [0, 0, 1, 1], [], []>} : vector<128x128xbf16>, vector<128x128xbf16>, vector<128x128xf32> -> vector<128x128xf32>
    %70 = arith.addf %64, %69 : vector<128x128xf32>
    %71 = vector.shape_cast %70 : vector<128x128xf32> to vector<1x8x16x128xf32>
    %c0_52 = arith.constant 0 : index
    %c0_53 = arith.constant 0 : index
    %c0_54 = arith.constant 0 : index
    %c0_55 = arith.constant 0 : index
    %72 = vector.load %arg5[%c0_52, %c0_53, %c0_54, %c0_55] : memref<1x8x16x128xf32, #tpu.memory_space<vmem>>, vector<1x8x16x128xf32>
    tpu.vector_store %arg5[%c0_52, %c0_53, %c0_54, %c0_55], %71 {strides = array<i32>} : memref<1x8x16x128xf32, #tpu.memory_space<vmem>>, vector<1x8x16x128xf32>,
    return
  }
  func.func @transform_0(%arg0: i32, %arg1: i32) -> (i32, i32, i32, i32) {
    %c0_i32 = arith.constant 0 : i32
    %c0_i32_0 = arith.constant 0 : i32
    %c0_i32_1 = arith.constant 0 : i32
    %c0_i32_2 = arith.constant 0 : i32
    return %arg0, %c0_i32, %c0_i32_0, %c0_i32_1 : i32, i32, i32, i32
  }
  func.func @transform_1(%arg0: i32, %arg1: i32) -> (i32, i32, i32, i32) {
    %c0_i32 = arith.constant 0 : i32
    %c0_i32_0 = arith.constant 0 : i32
    %c0_i32_1 = arith.constant 0 : i32
    %c0_i32_2 = arith.constant 0 : i32
    %c0_i32_3 = arith.constant 0 : i32
    return %c0_i32, %c0_i32_0, %c0_i32_1, %c0_i32_2 : i32, i32, i32, i32
  }
  func.func @transform_2(%arg0: i32, %arg1: i32) -> (i32, i32) {
    %c0_i32 = arith.constant 0 : i32
    %c0_i32_0 = arith.constant 0 : i32
    %c0_i32_1 = arith.constant 0 : i32
    return %c0_i32, %c0_i32_0 : i32, i32
  }
  func.func @transform_3(%arg0: i32, %arg1: i32) -> (i32, i32, i32, i32) {
    %c0_i32 = arith.constant 0 : i32
    %c0_i32_0 = arith.constant 0 : i32
    %c0_i32_1 = arith.constant 0 : i32
    return %arg0, %arg1, %c0_i32, %c0_i32_0 : i32, i32, i32, i32
  }
}

</mosaic_0001>

<bundles_post_ra>
// kernel: tpu_custom_call.1
= control target key start
LH: loop header
LB: loop body
LE: loop exit
PB: predicated region body
PF: predicated region fallthrough
CT: control target
= control target key end

     0   :  { %8 = vsyncpa [#allocation3], 0  ;;  %s5653_s0 = inlined_call_operand.vmem [shape: bf16[2,18,18,128], index: 0, kind: input, shape index: {}]   ;;  %s5654_s1 = inlined_call_operand.vmem [shape: bf16[3,3,128,128], index: 1, kind: input, shape index: {}]   ;;  %s5655_s2 = inlined_call_operand.vmem [shape: f32[1,128], index: 2, kind: input, shape index: {}]   ;;  %s5656_s3 = inlined_call_operand.hbm [shape: f32[2,16,16,128], index: 3, kind: output, shape index: {}]  }
   0x1   :  { %10 = vsyncpa [#allocation3 + $0x1], 0  ;;  %s4361_s12 = smov 0   ;;  %s4363_s13 = smov 0  }
   0x2   :  { %s4365_s14 = smov 0   ;;  %s4367_s15 = smov 0  }
   0x3   :  { %s4369_s16 = smov 0   ;;  %s4371_s17 = smov 0  }
   0x4   :  { %s4373_s18 = smov 0   ;;  %s4375_s19 = smov 0  }
   0x5 LB: > { %s3106_s20 = sadd.s32 4294967295, %s4336_s19   ;;  %s3107_s21 = sadd.s32 4294967294, %s4336_s19   ;;  %s4336_s19 = sphi %s4375_s19, %s16_s19   ;;  %s4332_s18 = sphi %s4373_s18, %s5750_s18   ;;  %s4328_s17 = sphi %s4371_s17, %s5749_s17   ;;  %s4324_s16 = sphi %s4369_s16, %s5748_s16   ;;  %s4320_s15 = sphi %s4367_s15, %s5747_s15   ;;  %s4316_s14 = sphi %s4365_s14, %s5746_s14   ;;  %s4312_s13 = sphi %s4363_s13, %s5745_s13   ;;  %s4308_s12 = sphi %s4361_s12, %s5744_s12  }
   0x6   : > { %s25_s22 = sadd.s32 1, %s4328_s17  ;;  %s28_s23 = sadd.s32 1, %s4332_s18 }
   0x7   : > { %p26_p0 = scmp.ge.s32.totalorder %s25_s22, 2  ;;  %p115_p1 = scmp.ne.s32.totalorder %s4316_s14, %s4312_s13 }
   0x8   : > { %p116_p2 = scmp.eq.s32.totalorder %s3106_s20, 3  ;;  %p121_p5 = scmp.ne.s32.totalorder %s4312_s13, %s4308_s12 }
   0x9   : > { %s5752_s22 = smov (%p26_p0, %s25_s22), 0  ;;  %s5754_s23 = smov (!%p26_p0, %s28_s23), %s4332_s18 }
   0xa   : > { %s101_s24 = ssub.s32 %s4328_s17, %s5752_s22  ;;  %p4412_p3 = por %p116_p2, %p115_p1 }
   0xb   : > { %p30_p4 = scmp.ge.s32.totalorder %s5754_s23, 2  ;;  %p122_p6 = scmp.eq.s32.totalorder %s3107_s21, 3 }
   0xc   : > { %p3110_p7 = scmp.ge.s32.totalorder %s4336_s19, 1  ;;  %p154_p9 = scmp.lt.s32.totalorder %s4336_s19, 5 }
   0xd   : > { %s5756_s23 = smov (%p30_p4, %s5754_s23), 0  ;;  %p4421_p8 = por %p122_p6, %p121_p5 }
   0xe   : > { %s100_s27 = ssub.s32 %s4332_s18, %s5756_s23  ;;  %s105_s28 = sadd.s32 1, %s4316_s14 }
   0xf   : > { %s102_s29 = sor.u32 %s101_s24, %s100_s27  ;;  %p155_p10 = pnand %p3110_p7, %p154_p9 }
  0x10   : > { %p103_p11 = scmp.eq.s32.totalorder %s102_s29, 0 }
  0x11   : > { %158 = sbr.rel (%p155_p10) target bundleno = 447 (0x1bf), region = 32 }
  0x12   : > { %s4430_s30 = scalar_select %p103_p11, %s4316_s14, %s105_s28  }
  0x18   : > { %v4140_v0 = vld [vmem:[%s5654_s1] sm:$0xff]   ;;  %p178_p12 = scmp.lt.s32.totalorder %s4324_s16, 1  ;;  %v4142_v2 = vld [vmem:[%s5654_s1 + $0x8] sm:$0xff]   ;;  %v4144_v4 = vld [vmem:[%s5654_s1 + $0x10] sm:$0xff]   ;;  %s3472_s8 = smul.u32 96, %s4320_s15  ;;  %vm858_vm2 = vcmask 1042432  }
  0x19   : > { %v4141_v1 = vld [vmem:[%s5654_s1 + $0x100] sm:$0xff]   ;;  %3618 = vmatprep.subr.bf16.mxu1 %v4140_v0  ;;  %v4143_v3 = vld [vmem:[%s5654_s1 + $0x108] sm:$0xff]   ;;  %v4145_v5 = vld [vmem:[%s5654_s1 + $0x110] sm:$0xff]   ;;  %vm445_vm0 = vsmask.f32 3328  ;;  %vm859_vm3 = vcmask 1046532  }
  0x1a   : > { %3746 = vmatprep.subr.bf16.mxu0 %v4141_v1  ;;  %3619 = vmatpush3.bf16.msra.mxu1 %v4140_v0  ;;  %s179_s20 = scalar_select %p178_p12, %s4324_s16, 1  ;;  %v4146_v6 = vld [vmem:[%s5654_s1 + $0x18] sm:$0xff]   ;;  %v4148_v8 = vld [vmem:[%s5654_s1 + $0x20] sm:$0xff]   ;;  %v4150_v10 = vld [vmem:[%s5654_s1 + $0x28] sm:$0xff]   ;;  %vm446_vm1 = vsmask.f32 7440 }
  0x1b   : > { %3747 = vmatpush3.bf16.msra.mxu0 %v4141_v1  ;;  %3620 = vmatprep.subr.bf16.mxu1 %v4142_v2  ;;  %v4147_v7 = vld [vmem:[%s5654_s1 + $0x118] sm:$0xff]   ;;  %v4149_v9 = vld [vmem:[%s5654_s1 + $0x120] sm:$0xff]   ;;  %v4151_v13 = vld [vmem:[%s5654_s1 + $0x128] sm:$0xff]   ;;  %s3473_s24 = sshll.u32 %s4320_s15, 4  ;;  %s3468_s27 = sshll.u32 %s4324_s16, 5 }
  0x1c   : > { %3748 = vmatprep.subr.bf16.mxu0 %v4143_v3  ;;  %s4066_s29 = smul.u32 216, %s179_s20  ;;  %v4152_v19 = vld [vmem:[%s5654_s1 + $0x30] sm:$0xff]   ;;  %v4154_v38 = vld [vmem:[%s5654_s1 + $0x38] sm:$0xff]   ;;  %vm4542_vm4 = vmor %vm445_vm0, %vm446_vm1  ;;  %s4338_s9 = smov [#allocation2]  }
  0x1d   : > { %v4153_v22 = vld [vmem:[%s5654_s1 + $0x130] sm:$0xff]   ;;  %v4155_v44 = vld [vmem:[%s5654_s1 + $0x138] sm:$0xff]   ;;  %vm4620_vm5 = vmor %vm858_vm2, %vm859_vm3 }
  0x1e   : > { %3621 = vmatpush3.bf16.msra.mxu1 %v4142_v2  ;;  %s182_s11 = scalar_lea.vmem %s5653_s0, %s4066_s29  ;;  %s3017_s29 = sadd.s32 %s3473_s24, %s3468_s27 }
  0x1f   : > { %3749 = vmatpush3.bf16.msra.mxu0 %v4143_v3  ;;  %3622 = vmatprep.subr.bf16.mxu1 %v4144_v4  ;;  %s4468_s28 = scalar_lea.vmem %s182_s11, %s3472_s8  ;;  %s175_s11 = sand.u32 1, %s4312_s13  }
  0x20   : > { %3750 = vmatprep.subr.bf16.mxu0 %v4145_v5  ;;  %v4474_v11 = vld [vmem:[%s4468_s28] sm:$0xf]  ;;  %v4477_v12 = vld [vmem:[%s4468_s28 + $0x4] sm:$0xf]  ;;  %v4488_v18 = vld [vmem:[%s4468_s28 + $0xc] sm:$0xf] }
  0x21   : > { %5672 = vst [vmem:[#allocation5_spill] sm:$0xff] %v4477_v12  ;;  %v3117_v14 = vcombine.low %v4474_v11, %v4477_v12  ;;  %v449_v15 = vshrl.u32 %v4474_v11, 16  ;;  %v452_v16 = vshll.u32 %v4474_v11, 16  ;;  %v458_v17 = vshll.u32 %v4477_v12, 16  ;;  %5673 = vst [vmem:[#allocation6_spill] sm:$0xff] %v4488_v18  ;;  %s3111_s20 = sshll.u32 %s175_s11, 7 }
  0x22   : > { %3623 = vmatpush3.bf16.msra.mxu1 %v4144_v4  ;;  %v462_v20 = vshrl.u32 %v4477_v12, 16  ;;  %v3165_v21 = vrot.slane %v4474_v11, 9  ;;  %v5657_v25 = vrot.slane %v4477_v12, 5  ;;  %v4504_v26 = vld [vmem:[%s4468_s28 + $0x10] sm:$0xf]  ;;  %v1382_v27 = vshrl.u32 %v4488_v18, 16 }
  0x23   : > { %3751 = vmatpush3.bf16.msra.mxu0 %v4145_v5  ;;  %3624 = vmatprep.subr.bf16.mxu1 %v4146_v6  ;;  %v4498_v23 = vrot.slane %v449_v15, 4  ;;  %v4500_v24 = vrot.slane %v452_v16, 5  ;;  %5674 = vst [vmem:[#allocation7_spill] sm:$0xff] %v4504_v26  ;;  %v4507_v28 = vrot.slane %v458_v17, 5  ;;  %v4510_v29 = vld [vmem:[%s4468_s28 + $0x14] sm:$0x1] }
  0x24   : > { %3752 = vmatprep.subr.bf16.mxu0 %v4147_v7  ;;  %3634 = vmatprep.mubr.bf16.mxu1 %v3117_v14  ;;  %v1385_v30 = vshll.u32 %v4488_v18, 16  ;;  %v1391_v31 = vshll.u32 %v4504_v26, 16  ;;  %v1395_v32 = vshrl.u32 %v4504_v26, 16  ;;  %v4515_v33 = vrot.slane %v462_v20, 4  ;;  %v4520_v37 = vld [vmem:[%s4468_s28 + $0xc] sm:$0xf] }
  0x25   : > { %v1384_v34 = vrot.slane %v1382_v27, 4  ;;  %v1401_v35 = vshll.u32 %v4510_v29, 16  ;;  %v4526_v42 = vld [vmem:[%s4468_s28 + $0x10] sm:$0xf]  ;;  %v473_v43 = vshrl.u32 %v4520_v37, 16  ;;  %v476_v46 = vshll.u32 %v4520_v37, 16 }
  0x26   : > { %3625 = vmatpush3.bf16.msra.mxu1 %v4146_v6  ;;  %v1387_v39 = vrot.slane %v1385_v30, 5  ;;  %v1393_v40 = vrot.slane %v1391_v31, 5  ;;  %v1397_v41 = vrot.slane %v1395_v32, 4  ;;  %5675 = vst [vmem:[#allocation8_spill] sm:$0xff] %v4526_v42  ;;  %v482_v47 = vshll.u32 %v4526_v42, 16  ;;  %v4574_v16 = vld [vmem:[%s5654_s1 + $0x140] sm:$0xff]  }
  0x27   : > { %3753 = vmatpush3.bf16.msra.mxu0 %v4147_v7  ;;  %3626 = vmatprep.subr.bf16.mxu1 %v4148_v8  ;;  %v1403_v45 = vrot.slane %v1401_v35, 5  ;;  %v455_v48 = vor.u32 %v4500_v24, %v4498_v23  ;;  %v475_v51 = vrot.slane %v473_v43, 4  ;;  %v486_v52 = vshrl.u32 %v4526_v42, 16  ;;  %v4538_v53 = vld [vmem:[%s4468_s28 + $0x18] sm:$0xf]  ;;  %v4176_v24 = vld [vmem:[%s5654_s1 + $0x70] sm:$0xff]  }
  0x28   : > { %3754 = vmatprep.subr.bf16.mxu0 %v4149_v9  ;;  %v1388_v49 = vor.u32 %v1387_v39, %v1384_v34  ;;  %v1398_v50 = vor.u32 %v1397_v41, %v1393_v40  ;;  %v478_v55 = vrot.slane %v476_v46, 5  ;;  %v4546_v56 = vrot.slane %v482_v47, 5  ;;  %v4551_v59 = vld [vmem:[%s4468_s28 + $0x1c] sm:$0xf]  ;;  %v4557_v2 = vld [vmem:[%s4468_s28 + $0x20] sm:$0x1] }
  0x29   : > { %v3166_v57 = vrot.slane %v4520_v37, 9  ;;  %v5658_v58 = vrot.slane %v4526_v42, 5  ;;  %v488_v62 = vrot.slane %v486_v52, 4  ;;  %v1406_v63 = vshrl.u32 %v4538_v53, 16  ;;  %v4582_v30 = vld [vmem:[%s4468_s28 + $0x18] sm:$0xf] }
  0x2a   : > { %3627 = vmatpush3.bf16.msra.mxu1 %v4148_v8  ;;  %v1389_v60 = vrot.slane %v1388_v49, 4  ;;  %v1399_v61 = vrot.slane %v1398_v50, 4  ;;  %v3118_v0 = vcombine.low %v4520_v37, %v4526_v42  ;;  %v479_v1 = vor.u32 %v478_v55, %v475_v51  ;;  %v4158_v8 = vld [vmem:[%s5654_s1 + $0x40] sm:$0xff]   ;;  %v4585_v31 = vld [vmem:[%s4468_s28 + $0x1c] sm:$0xf]  ;;  %v4160_v39 = vld [vmem:[%s5654_s1 + $0x48] sm:$0xff]  }
  0x2b   : > { %3755 = vmatpush3.bf16.msra.mxu0 %v4149_v9  ;;  %3628 = vmatprep.subr.bf16.mxu1 %v4150_v10  ;;  %v1409_v3 = vshll.u32 %v4538_v53, 16  ;;  %v1415_v4 = vshll.u32 %v4551_v59, 16  ;;  %v489_v7 = vor.u32 %v488_v62, %v4546_v56  ;;  %v1408_v9 = vrot.slane %v1406_v63, 4  ;;  %v4600_v43 = vld [vmem:[%s4468_s28 + $0x24] sm:$0xf]  ;;  %s5563_s21 = scalar_lea.vmem [#allocation2], %s3111_s20 }
  0x2c   : > { %3756 = vmatprep.subr.bf16.mxu0 %v4151_v13  ;;  %v1394_v5 = vsel %vm4542_vm4, %v1389_v60, %v1393_v40  ;;  %v1404_v6 = vsel %vm4542_vm4, %v1399_v61, %v1403_v45  ;;  %v1425_v20 = vshll.u32 %v4557_v2, 16  ;;  %v3119_v40 = vcombine.low %v4582_v30, %v4585_v31  ;;  %v4606_v47 = vld [vmem:[%s4468_s28 + $0x28] sm:$0xf]  ;;  %v4610_v51 = vld [vmem:[%s4468_s28 + $0x2c] sm:$0x1]  ;;  %v4164_v61 = vld [vmem:[%s5654_s1 + $0x50] sm:$0xff]  }
  0x2d   : > { %v1411_v14 = vrot.slane %v1409_v3, 5  ;;  %v1417_v15 = vrot.slane %v1415_v4, 5  ;;  %v4576_v17 = vrot.slane %v489_v7, 4  ;;  %v1430_v49 = vshrl.u32 %v4600_v43, 16  ;;  %v4628_v3 = vld [vmem:[%s4468_s28 + $0x24] sm:$0xf] }
  0x2e   : > { %3629 = vmatpush3.bf16.msra.mxu1 %v4150_v10  ;;  %v3279_v10 = vcombine.low %v1394_v5, %v1404_v6  ;;  %v1433_v52 = vshll.u32 %v4600_v43, 16  ;;  %v1439_v55 = vshll.u32 %v4606_v47, 16  ;;  %v1443_v60 = vshrl.u32 %v4606_v47, 16  ;;  %v4631_v4 = vld [vmem:[%s4468_s28 + $0x28] sm:$0xf]  ;;  %v4687_v37 = vld [vmem:[%s5654_s1 + $0x60] sm:$0xff]  }
  0x2f   : > { %3757 = vmatpush3.bf16.msra.mxu0 %v4151_v13  ;;  %3630 = vmatprep.subr.bf16.mxu1 %v4152_v19  ;;  %v4569_v13 = vrot.slane %v479_v1, 4  ;;  %v1412_v27 = vor.u32 %v1411_v14, %v1408_v9  ;;  %v1449_v1 = vshll.u32 %v4610_v51, 16  ;;  %v4639_v5 = vsel %vm4620_vm5, %v3165_v21, %v5657_v25  ;;  %v4161_v21 = vld [vmem:[%s5654_s1 + $0x148] sm:$0xff]   ;;  %v4836_v12 = vld [vmem:[%s4468_s28 + $0x60] sm:$0xf]  ;;  %s3469_s15 = sshll.u32 %s3017_s29, 7 }
  0x30   : > { %3758 = vmatprep.subr.bf16.mxu0 %v4153_v22  ;;  %3762 = vmatprep.mubr.bf16.mxu0 %v3279_v10  ;;  %5680 = vst [vmem:[#allocation9_spill] sm:$0xff] %v4639_v5  ;;  %v1435_v7 = vrot.slane %v1433_v52, 5  ;;  %v1445_v9 = vrot.slane %v1443_v60, 4  ;;  %v3120_v14 = vcombine.low %v4628_v3, %v4631_v4  ;;  %v4166_v60 = vld [vmem:[%s5654_s1 + $0x58] sm:$0xff]   ;;  %5683 = vst [vmem:[#allocation12_spill] sm:$0xff] %v4836_v12  ;;  %s3020_s16 = sshll.u32 %s5563_s21, 4  ;;  %s5591_s6 = scalar_lea.hbm %s5656_s3, %s3469_s15  ;;  %s5593_s16 = int_to_ptr.vmem [resolvable:$true] %s3020_s16 }
  0x31   : > { %v1413_v45 = vrot.slane %v1412_v27, 4  ;;  %v1451_v10 = vrot.slane %v1449_v1, 5  ;;  %v5546_v62 = vld [vmem:[%s5655_s2] ss:$0 sm:$0xff]  ;;  %s5601_s7 = scalar_lea.sflag [#allocation3], %s175_s11  ;;  %s4242_s8 = scalar_lea.vmem %s5593_s16, 2048 }
  0x32   : > { %3631 = vmatpush3.bf16.msra.mxu1 %v4152_v19  ;;  %v1419_v19 = vshrl.u32 %v4551_v59, 16  ;;  %p4243_p13 = scmp.ne.s32.totalorder %s5593_s16, %s4242_s8 }
  0x33   : > { %3759 = vmatpush3.bf16.msra.mxu0 %v4153_v22  ;;  %3632 = vmatprep.subr.bf16.mxu1 %v4154_v38  ;;  %v1418_v63 = vsel %vm4542_vm4, %v1413_v45, %v1417_v15  ;;  %v4655_v45 = vld [vmem:[%s4468_s28 + $0x34] sm:$0xf] }
  0x34   : > { %3760 = vmatprep.subr.bf16.mxu0 %v4155_v44  ;;  %v1421_v35 = vrot.slane %v1419_v19, 4  ;;  %p4244_p0 = pnand %p4243_p13, %p4412_p3 }
  0x36   : > { %3633 = vmatpush3.bf16.msra.mxu1 %v4154_v38  ;;  %v1427_v38 = vrot.slane %v1425_v20, 5  ;;  %v1422_v50 = vor.u32 %v1421_v35, %v1417_v15  ;;  %p4245_p1 = pneg %p4244_p0 }
  0x37   : > { %3761 = vmatpush3.bf16.msra.mxu0 %v4155_v44  ;;  %3650 = vmatprep.subr.bf16.mxu1 %v4158_v8  ;;  %v4741_v44 = vld [vmem:[%s4468_s28 + $0x48] sm:$0xf] }
  0x38   : > { %3778 = vmatprep.subr.bf16.mxu0 %v4574_v16  ;;  %v1423_v6 = vrot.slane %v1422_v50, 4  ;;  %v4658_v50 = vld [vmem:[%s4468_s28 + $0x38] sm:$0x1] }
  0x39   : > { %3635 = vmatmul.mubr.bf16.vlgmr.msra.gmra.mrb[0].mxu1 %v3118_v0  ;;  %v1432_v0 = vrot.slane %v1430_v49, 4 }
  0x3a   : > { %3651 = vmatpush3.bf16.msra.mxu1 %v4158_v8  ;;  %3638 = vmatprep.mubr.bf16.mxu1 %v3119_v40  ;;  %v1441_v8 = vrot.slane %v1439_v55, 5  ;;  %v1428_v19 = vsel %vm4542_vm4, %v1423_v6, %v1427_v38  ;;  %v4652_v40 = vld [vmem:[%s4468_s28 + $0x30] sm:$0xf]  ;;  %v1463_v55 = vshll.u32 %v4655_v45, 16  ;;  %v1467_v6 = vshrl.u32 %v4655_v45, 16 }
  0x3b   : > { %3652 = vmatprep.subr.bf16.mxu1 %v4160_v39  ;;  %v1436_v20 = vor.u32 %v1435_v7, %v1432_v0  ;;  %v3280_v49 = vcombine.low %v1418_v63, %v1428_v19  ;;  %v1454_v52 = vshrl.u32 %v4652_v40, 16  ;;  %v1457_v38 = vshll.u32 %v4652_v40, 16  ;;  %v4165_v19 = vld [vmem:[%s5654_s1 + $0x150] sm:$0xff]  }
  0x3c   : > { %v1446_v27 = vor.u32 %v1445_v9, %v1441_v8  ;;  %v1473_v63 = vshll.u32 %v4658_v50, 16  ;;  %v1465_v9 = vrot.slane %v1463_v55, 5 }
  0x3d   : > { %v1437_v0 = vrot.slane %v1436_v20, 4  ;;  %3763 = vmatmul.mubr.bf16.vlgmr.msra.gmra.mrb[0].mxu0 %v3280_v49  ;;  %v1459_v7 = vrot.slane %v1457_v38, 5  ;;  %v4677_v20 = vsel %vm4620_vm5, %v3166_v57, %v5658_v58 }
  0x3e   : > { %3653 = vmatpush3.bf16.msra.mxu1 %v4160_v39  ;;  %v1447_v1 = vrot.slane %v1446_v27, 4  ;;  %v1456_v39 = vrot.slane %v1454_v52, 4  ;;  %5681 = vst [vmem:[#allocation10_spill] sm:$0xff] %v4677_v20  ;;  %3779 = vmatpush3.bf16.msra.mxu0 %v4574_v16  ;;  %v1469_v52 = vrot.slane %v1467_v6, 4  ;;  %v1475_v38 = vrot.slane %v1473_v63, 5 }
  0x3f   : > { %3654 = vmatprep.subr.bf16.mxu1 %v4164_v61  ;;  %v1442_v27 = vsel %vm4542_vm4, %v1437_v0, %v1441_v8  ;;  %3780 = vmatprep.subr.bf16.mxu0 %v4161_v21  ;;  %v4690_v16 = vld [vmem:[%s4468_s28 + $0x30] sm:$0xf]  ;;  %v4700_v6 = vld [vmem:[%s4468_s28 + $0x3c] sm:$0xf] }
  0x40   : > { %v1452_v49 = vsel %vm4542_vm4, %v1447_v1, %v1451_v10  ;;  %v1460_v55 = vor.u32 %v1459_v7, %v1456_v39  ;;  %v1470_v10 = vor.u32 %v1469_v52, %v1465_v9  ;;  %v1478_v25 = vshrl.u32 %v4700_v6, 16  ;;  %v4719_v63 = vld [vmem:[%s4468_s28 + $0x3c] sm:$0xf]  ;;  %v4729_v52 = vld [vmem:[%s4468_s28 + $0x40] sm:$0xf] }
  0x41   : > { %3639 = vmatmul.mubr.bf16.gmra.mrb[4].mxu1 %v3120_v14  ;;  %v3281_v57 = vcombine.low %v1442_v27, %v1452_v49  ;;  %v4695_v14 = vld [vmem:[%s4468_s28 + $0x34] sm:$0xf]  ;;  %v4708_v27 = vld [vmem:[%s4468_s28 + $0x40] sm:$0xf]  ;;  %v4711_v49 = vld [vmem:[%s4468_s28 + $0x44] sm:$0x1]  ;;  %v3122_v1 = vcombine.low %v4719_v63, %v4729_v52 }
  0x42   : > { %3655 = vmatpush3.bf16.msra.mxu1 %v4164_v61  ;;  %v1461_v61 = vrot.slane %v1460_v55, 4  ;;  %v3121_v39 = vcombine.low %v4690_v16, %v4695_v14  ;;  %3781 = vmatpush3.bf16.msra.mxu0 %v4161_v21  ;;  %v1471_v8 = vrot.slane %v1470_v10, 4  ;;  %v1487_v55 = vshll.u32 %v4708_v27, 16  ;;  %v4167_v7 = vld [vmem:[%s5654_s1 + $0x158] sm:$0xff]  }
  0x43   : > { %3656 = vmatprep.subr.bf16.mxu1 %v4166_v60  ;;  %3766 = vmatprep.mubr.bf16.mxu0 %v3281_v57  ;;  %v1481_v57 = vshll.u32 %v4700_v6, 16  ;;  %v1491_v21 = vshrl.u32 %v4708_v27, 16  ;;  %v1497_v10 = vshll.u32 %v4711_v49, 16 }
  0x44   : > { %v1466_v58 = vsel %vm4542_vm4, %v1461_v61, %v1465_v9  ;;  %3782 = vmatprep.subr.bf16.mxu0 %v4165_v19  ;;  %v1476_v0 = vsel %vm4542_vm4, %v1471_v8, %v1475_v38  ;;  %3642 = vmatprep.mubr.bf16.mxu1 %v3121_v39  ;;  %v1480_v9 = vrot.slane %v1478_v25, 4  ;;  %v1489_v35 = vrot.slane %v1487_v55, 5  ;;  %v4746_v39 = vld [vmem:[%s4468_s28 + $0x4c] sm:$0xf] }
  0x45   : > { %v1483_v61 = vrot.slane %v1481_v57, 5  ;;  %v3282_v11 = vcombine.low %v1466_v58, %v1476_v0  ;;  %v1493_v15 = vrot.slane %v1491_v21, 4  ;;  %v1499_v46 = vrot.slane %v1497_v10, 5  ;;  %v4749_v57 = vld [vmem:[%s4468_s28 + $0x50] sm:$0x1]  ;;  %v4171_v10 = vld [vmem:[%s5654_s1 + $0x160] sm:$0xff]  }
  0x46   : > { %3657 = vmatpush3.bf16.msra.mxu1 %v4166_v60  ;;  %v4172_v60 = vld [vmem:[%s5654_s1 + $0x68] sm:$0xff]   ;;  %3783 = vmatpush3.bf16.msra.mxu0 %v4165_v19  ;;  %v1502_v55 = vshrl.u32 %v4741_v44, 16  ;;  %v1505_v21 = vshll.u32 %v4741_v44, 16  ;;  %v1511_v19 = vshll.u32 %v4746_v39, 16  ;;  %v1521_v8 = vshll.u32 %v4749_v57, 16 }
  0x47   : > { %3658 = vmatprep.subr.bf16.mxu1 %v4687_v37  ;;  %v1484_v38 = vor.u32 %v1483_v61, %v1480_v9  ;;  %3767 = vmatmul.mubr.bf16.gmra.mrb[4].mxu0 %v3282_v11  ;;  %v1494_v0 = vor.u32 %v1493_v15, %v1489_v35  ;;  %v1515_v61 = vshrl.u32 %v4746_v39, 16  ;;  %v4764_v15 = vrot.slane %v455_v48, 4 }
  0x48   : > { %3784 = vmatprep.subr.bf16.mxu0 %v4167_v7  ;;  %v1504_v58 = vrot.slane %v1502_v55, 4  ;;  %v1507_v25 = vrot.slane %v1505_v21, 5  ;;  %v1513_v22 = vrot.slane %v1511_v19, 5  ;;  %v1523_v23 = vrot.slane %v1521_v8, 5  ;;  %v4785_v8 = vld [vmem:[%s4468_s28 + $0x4c] sm:$0xf] }
  0x49   : > { %v1485_v9 = vrot.slane %v1484_v38, 4  ;;  %3643 = vmatmul.mubr.bf16.gmra.mrb[8].mxu1 %v3122_v1  ;;  %v1495_v11 = vrot.slane %v1494_v0, 4  ;;  %v4173_v1 = vld [vmem:[%s5654_s1 + $0x168] sm:$0xff]   ;;  %v1517_v34 = vrot.slane %v1515_v61, 4  ;;  %v4178_v61 = vld [vmem:[%s5654_s1 + $0x78] sm:$0xff]  }
  0x4a   : > { %3659 = vmatpush3.bf16.msra.mxu1 %v4687_v37  ;;  %3785 = vmatpush3.bf16.msra.mxu0 %v4167_v7  ;;  %v1508_v7 = vor.u32 %v1507_v25, %v1504_v58  ;;  %v4795_v25 = vld [vmem:[%s4468_s28 + $0x54] sm:$0xf]  ;;  %v4798_v58 = vld [vmem:[%s4468_s28 + $0x58] sm:$0xf] }
  0x4b   : > { %v1490_v38 = vsel %vm4542_vm4, %v1485_v9, %v1489_v35  ;;  %3660 = vmatprep.subr.bf16.mxu1 %v4172_v60  ;;  %v1500_v37 = vsel %vm4542_vm4, %v1495_v11, %v1499_v46  ;;  %3786 = vmatprep.subr.bf16.mxu0 %v4171_v10  ;;  %v4782_v35 = vld [vmem:[%s4468_s28 + $0x48] sm:$0xf]  ;;  %v1518_v19 = vor.u32 %v1517_v34, %v1513_v22  ;;  %v1529_v46 = vshll.u32 %v4795_v25, 16 }
  0x4c   : > { %v3283_v21 = vcombine.low %v1490_v38, %v1500_v37  ;;  %v3123_v9 = vcombine.low %v4782_v35, %v4785_v8  ;;  %v1509_v11 = vrot.slane %v1508_v7, 4  ;;  %v4806_v38 = vld [vmem:[%s4468_s28 + $0x5c] sm:$0x1]  ;;  %v1526_v37 = vshrl.u32 %v4795_v25, 16  ;;  %v4813_v7 = vld [vmem:[%s4468_s28 + $0x54] sm:$0xf] }
  0x4d   : > { %v1519_v0 = vrot.slane %v1518_v19, 4  ;;  %v1535_v48 = vshll.u32 %v4798_v58, 16  ;;  %v1539_v36 = vshrl.u32 %v4798_v58, 16  ;;  %v1545_v55 = vshll.u32 %v4806_v38, 16  ;;  %v4177_v19 = vld [vmem:[%s5654_s1 + $0x170] sm:$0xff]  }
  0x4e   : > { %3661 = vmatpush3.bf16.msra.mxu1 %v4172_v60  ;;  %3770 = vmatprep.mubr.bf16.mxu0 %v3283_v21  ;;  %v1514_v60 = vsel %vm4542_vm4, %v1509_v11, %v1513_v22  ;;  %v1528_v34 = vrot.slane %v1526_v37, 4  ;;  %v4819_v21 = vld [vmem:[%s4468_s28 + $0x58] sm:$0xf]  ;;  %v1531_v32 = vrot.slane %v1529_v46, 5  ;;  %v4830_v11 = vld [vmem:[%s5654_s1 + $0x80] sm:$0xff]  }
  0x4f   : > { %3787 = vmatpush3.bf16.msra.mxu0 %v4171_v10  ;;  %3646 = vmatprep.mubr.bf16.mxu1 %v3123_v9  ;;  %5682 = vst [vmem:[#allocation11_spill] sm:$0xff] %v4819_v21  ;;  %v1524_v41 = vsel %vm4542_vm4, %v1519_v0, %v1523_v23  ;;  %v1537_v22 = vrot.slane %v1535_v48, 5  ;;  %v1541_v9 = vrot.slane %v1539_v36, 4  ;;  %v1547_v10 = vrot.slane %v1545_v55, 5  ;;  %v4179_v36 = vld [vmem:[%s5654_s1 + $0x178] sm:$0xff]  }
  0x50   : > { %3788 = vmatprep.subr.bf16.mxu0 %v4173_v1  ;;  %3662 = vmatprep.subr.bf16.mxu1 %v4176_v24  ;;  %v3284_v37 = vcombine.low %v1514_v60, %v1524_v41  ;;  %v3124_v20 = vcombine.low %v4813_v7, %v4819_v21  ;;  %v1532_v23 = vor.u32 %v1531_v32, %v1528_v34  ;;  %v4843_v46 = vld [vmem:[%s4468_s28 + $0x64] sm:$0xf]  ;;  %v4846_v41 = vld [vmem:[%s4468_s28 + $0x68] sm:$0x1]  ;;  %v1550_v55 = vshrl.u32 %v4836_v12, 16 }
  0x51   : > { %v1542_v48 = vor.u32 %v1541_v9, %v1537_v22  ;;  %5684 = vst [vmem:[#allocation13_spill] sm:$0xff] %v4843_v46  ;;  %v1559_v60 = vshll.u32 %v4843_v46, 16  ;;  %v1563_v5 = vshrl.u32 %v4843_v46, 16  ;;  %v1569_v32 = vshll.u32 %v4846_v41, 16 }
  0x52   : > { %3663 = vmatpush3.bf16.msra.mxu1 %v4176_v24  ;;  %3771 = vmatmul.mubr.bf16.gmra.mrb[8].mxu0 %v3284_v37  ;;  %v1553_v24 = vshll.u32 %v4836_v12, 16  ;;  %v1552_v9 = vrot.slane %v1550_v55, 4  ;;  %v5685_v0 = vor.u32 %v4515_v33, %v4507_v28 }
  0x53   : > { %3789 = vmatpush3.bf16.msra.mxu0 %v4173_v1  ;;  %3664 = vmatprep.subr.bf16.mxu1 %v4178_v61  ;;  %v1533_v1 = vrot.slane %v1532_v23, 4  ;;  %v1543_v34 = vrot.slane %v1542_v48, 4  ;;  %v1565_v37 = vrot.slane %v1563_v5, 4  ;;  %v1571_v12 = vrot.slane %v1569_v32, 5 }
  0x54   : > { %3647 = vmatmul.mubr.bf16.gmra.mrb[12].mxu1 %v3124_v20  ;;  %3790 = vmatprep.subr.bf16.mxu0 %v4177_v19  ;;  %v466_v42 = vrot.slane %v5685_v0, 4  ;;  %v1555_v21 = vrot.slane %v1553_v24, 5  ;;  %v1561_v20 = vrot.slane %v1559_v60, 5  ;;  %v4864_v24 = vld [vmem:[%s4468_s28 + $0x8] sm:$0x1]  ;;  %v3295_v5 = vrot.slane %v4488_v18, 9 }
  0x55   : > { %v1538_v46 = vsel %vm4542_vm4, %v1533_v1, %v1537_v22  ;;  %v1548_v23 = vsel %vm4542_vm4, %v1543_v34, %v1547_v10  ;;  %v4873_v10 = vld [vmem:[%s5654_s1 + $0x180] sm:$0xff]   ;;  %v1793_v22 = vrot.slane %v4504_v26, 5  ;;  %v1800_v1 = vrot.slane %v4551_v59, 5 }
  0x56   : > { %3665 = vmatpush3.bf16.msra.mxu1 %v4178_v61  ;;  %v3285_v48 = vcombine.low %v1538_v46, %v1548_v23  ;;  %v1556_v0 = vor.u32 %v1555_v21, %v1552_v9  ;;  %v1566_v55 = vor.u32 %v1565_v37, %v1561_v20  ;;  %v4868_v61 = vld [vmem:[%s4468_s28 + $0x14] sm:$0x1]  ;;  %v3296_v21 = vrot.slane %v4538_v53, 9 }
  0x57   : > { %3791 = vmatpush3.bf16.msra.mxu0 %v4177_v19  ;;  %3682 = vmatprep.subr.bf16.mxu1 %v4830_v11  ;;  %v468_v19 = vshll.u32 %v4864_v24, 16  ;;  %v492_v46 = vshll.u32 %v4868_v61, 16  ;;  %v5686_v34 = vshrl.u32 %v4582_v30, 16  ;;  %v1794_v23 = vsel %vm4620_vm5, %v3295_v5, %v1793_v22 }
  0x58   : > { %3792 = vmatprep.subr.bf16.mxu0 %v4179_v36  ;;  %3774 = vmatprep.mubr.bf16.mxu0 %v3285_v48  ;;  %v1557_v60 = vrot.slane %v1556_v0, 4  ;;  %v1567_v32 = vrot.slane %v1566_v55, 4  ;;  %v1795_v33 = vrot.slane %v1793_v22, 4  ;;  %v1801_v0 = vsel %vm4620_vm5, %v3296_v21, %v1800_v1 }
  0x59   : > { %v499_v9 = vrot.slane %v5686_v34, 4  ;;  %v470_v37 = vrot.slane %v468_v19, 5  ;;  %v494_v26 = vrot.slane %v492_v46, 5  ;;  %v1802_v55 = vrot.slane %v1800_v1, 4 }
  0x5a   : > { %v1562_v18 = vsel %vm4542_vm4, %v1557_v60, %v1561_v20  ;;  %v1572_v48 = vsel %vm4542_vm4, %v1567_v32, %v1571_v12  ;;  %v5687_v19 = vrot.slane %v4510_v29, 5  ;;  %v5688_v20 = vsel %vm4542_vm4, %v4764_v15, %v4507_v28  ;;  %v4915_v60 = vld [vmem:[%s4468_s28 + $0x20] sm:$0x1]  ;;  %v4182_v28 = vld [vmem:[%s5654_s1 + $0x88] sm:$0xff]  }
  0x5b   : > { %3793 = vmatpush3.bf16.msra.mxu0 %v4179_v36  ;;  %v3286_v36 = vcombine.low %v1562_v18, %v1572_v48  ;;  %v471_v5 = vsel %vm4542_vm4, %v466_v42, %v470_v37  ;;  %v495_v12 = vsel %vm4542_vm4, %v4576_v17, %v494_v26  ;;  %v5689_v18 = vsel %vm4542_vm4, %v4569_v13, %v4546_v56 }
  0x5c   : > { %3810 = vmatprep.subr.bf16.mxu0 %v4873_v10  ;;  %v1797_v22 = vsel %vm4620_vm5, %v1795_v33, %v5687_v19  ;;  %v3149_v46 = vcombine.low %v5688_v20, %v471_v5  ;;  %v3150_v29 = vcombine.low %v5689_v18, %v495_v12  ;;  %v5690_v42 = vrot.slane %v4557_v2, 5  ;;  %v4926_v2 = vld [vmem:[%s4468_s28 + $0x2c] sm:$0x1] }
  0x5d   : > { %v3319_v21 = vcombine.low %v1794_v23, %v1797_v22  ;;  %3775 = vmatmul.mubr.bf16.gmra.mrb[12].mxu0 %v3286_v36  ;;  %v5691_v17 = vshll.u32 %v4582_v30, 16  ;;  %v506_v32 = vshll.u32 %v4585_v31, 16  ;;  %v5692_v56 = vshrl.u32 %v4585_v31, 16 }
  0x5e   : > { %v1804_v33 = vsel %vm4620_vm5, %v1802_v55, %v5690_v42  ;;  %3666 = vmatprep.mubr.bf16.mxu1 %v3149_v46  ;;  %v516_v1 = vshll.u32 %v4915_v60, 16  ;;  %v3297_v34 = vrot.slane %v4600_v43, 9  ;;  %v1807_v37 = vrot.slane %v4606_v47, 5 }
  0x5f   : > { %v3320_v26 = vcombine.low %v1801_v0, %v1804_v33  ;;  %v502_v15 = vrot.slane %v5691_v17, 5  ;;  %v512_v13 = vrot.slane %v5692_v56, 4  ;;  %3794 = vmatprep.mubr.bf16.mxu0 %v3319_v21  ;;  %v1810_v23 = vrot.slane %v4610_v51, 5  ;;  %3667 = vmatmul.mubr.bf16.vlgmr.msra.gmra.mrb[0].mxu1 %v3150_v29  ;;  %v4184_v51 = vld [vmem:[%s5654_s1 + $0x90] sm:$0xff]   ;;  %v4183_v33 = vld [vmem:[%s5654_s1 + $0x188] sm:$0xff]  }
  0x60   : > { %v508_v48 = vrot.slane %v506_v32, 5  ;;  %v5693_v0 = vshrl.u32 %v4628_v3, 16  ;;  %v5694_v31 = vshll.u32 %v4628_v3, 16  ;;  %3683 = vmatpush3.bf16.msra.mxu1 %v4830_v11  ;;  %v518_v5 = vrot.slane %v516_v1, 5 }
  0x61   : > { %v503_v30 = vor.u32 %v502_v15, %v499_v9  ;;  %v1808_v19 = vsel %vm4620_vm5, %v3297_v34, %v1807_v37  ;;  %v1809_v22 = vrot.slane %v1807_v37, 4  ;;  %v530_v12 = vshll.u32 %v4631_v4, 16  ;;  %3684 = vmatprep.subr.bf16.mxu1 %v4182_v28 }
  0x62   : > { %v523_v55 = vrot.slane %v5693_v0, 4  ;;  %v526_v36 = vrot.slane %v5694_v31, 5  ;;  %v513_v20 = vor.u32 %v512_v13, %v508_v48  ;;  %v5695_v3 = vshrl.u32 %v4631_v4, 16  ;;  %v4955_v4 = vld [vmem:[%s4468_s28 + $0x38] sm:$0x1] }
  0x63   : > { %v504_v9 = vrot.slane %v503_v30, 4  ;;  %v1811_v11 = vsel %vm4620_vm5, %v1809_v22, %v1810_v23  ;;  %v532_v18 = vrot.slane %v530_v12, 5  ;;  %v540_v29 = vshll.u32 %v4926_v2, 16  ;;  %v4186_v23 = vld [vmem:[%s5654_s1 + $0x98] sm:$0xff]  }
  0x64   : > { %v527_v46 = vor.u32 %v526_v36, %v523_v55  ;;  %v536_v21 = vrot.slane %v5695_v3, 4  ;;  %v3298_v42 = vrot.slane %v4652_v40, 9  ;;  %v514_v15 = vrot.slane %v513_v20, 4  ;;  %3685 = vmatpush3.bf16.msra.mxu1 %v4182_v28 }
  0x65   : > { %v509_v17 = vsel %vm4542_vm4, %v504_v9, %v508_v48  ;;  %v3321_v32 = vcombine.low %v1808_v19, %v1811_v11  ;;  %v542_v1 = vrot.slane %v540_v29, 5  ;;  %v1814_v34 = vrot.slane %v4655_v45, 5  ;;  %3795 = vmatmul.mubr.bf16.vlgmr.msra.gmra.mrb[0].mxu0 %v3320_v26  ;;  %3686 = vmatprep.subr.bf16.mxu1 %v4184_v51 }
  0x66   : > { %v528_v56 = vrot.slane %v527_v46, 4  ;;  %v537_v13 = vor.u32 %v536_v21, %v532_v18  ;;  %v1817_v37 = vrot.slane %v4658_v50, 5  ;;  %v519_v30 = vsel %vm4542_vm4, %v514_v15, %v518_v5  ;;  %3811 = vmatpush3.bf16.msra.mxu0 %v4873_v10  ;;  %v4185_v5 = vld [vmem:[%s5654_s1 + $0x190] sm:$0xff]   ;;  %v4987_v15 = vld [vmem:[%s4468_s28 + $0x44] sm:$0x1] }
  0x67   : > { %v5696_v28 = vshrl.u32 %v4690_v16, 16  ;;  %v5697_v55 = vshll.u32 %v4690_v16, 16  ;;  %v3151_v50 = vcombine.low %v509_v17, %v519_v30  ;;  %3798 = vmatprep.mubr.bf16.mxu0 %v3321_v32  ;;  %v1815_v26 = vsel %vm4620_vm5, %v3298_v42, %v1814_v34  ;;  %3812 = vmatprep.subr.bf16.mxu0 %v4183_v33  ;;  %v4188_v32 = vld [vmem:[%s5654_s1 + $0xa0] sm:$0xff]  }
  0x68   : > { %v533_v48 = vsel %vm4542_vm4, %v528_v56, %v532_v18  ;;  %v538_v36 = vrot.slane %v537_v13, 4  ;;  %v1816_v19 = vrot.slane %v1814_v34, 4  ;;  %v554_v12 = vshll.u32 %v4695_v14, 16  ;;  %3687 = vmatpush3.bf16.msra.mxu1 %v4184_v51  ;;  %v4187_v51 = vld [vmem:[%s5654_s1 + $0x198] sm:$0xff]  }
  0x69   : > { %v547_v0 = vrot.slane %v5696_v28, 4  ;;  %v550_v31 = vrot.slane %v5697_v55, 5  ;;  %v5698_v9 = vshrl.u32 %v4695_v14, 16  ;;  %v564_v10 = vshll.u32 %v4955_v4, 16  ;;  %3670 = vmatprep.mubr.bf16.mxu1 %v3151_v50  ;;  %3688 = vmatprep.subr.bf16.mxu1 %v4186_v23 }
  0x6a   : > { %v543_v46 = vsel %vm4542_vm4, %v538_v36, %v542_v1  ;;  %v1818_v3 = vsel %vm4620_vm5, %v1816_v19, %v1817_v37  ;;  %v3299_v21 = vrot.slane %v4700_v6, 9  ;;  %v1821_v11 = vrot.slane %v4708_v27, 5  ;;  %3813 = vmatpush3.bf16.msra.mxu0 %v4183_v33 }
  0x6b   : > { %v551_v22 = vor.u32 %v550_v31, %v547_v0  ;;  %v560_v20 = vrot.slane %v5698_v9, 4  ;;  %v3152_v18 = vcombine.low %v533_v48, %v543_v46  ;;  %v3322_v29 = vcombine.low %v1815_v26, %v1818_v3  ;;  %3814 = vmatprep.subr.bf16.mxu0 %v4185_v5  ;;  %v4190_v26 = vld [vmem:[%s5654_s1 + $0xa8] sm:$0xff]   ;;  %v5017_v3 = vld [vmem:[%s4468_s28 + $0x50] sm:$0x1] }
  0x6c   : > { %v556_v17 = vrot.slane %v554_v12, 5  ;;  %v566_v56 = vrot.slane %v564_v10, 5  ;;  %v1822_v13 = vsel %vm4620_vm5, %v3299_v21, %v1821_v11  ;;  %v1823_v1 = vrot.slane %v1821_v11, 4  ;;  %3689 = vmatpush3.bf16.msra.mxu1 %v4186_v23 }
  0x6d   : > { %v552_v42 = vrot.slane %v551_v22, 4  ;;  %v1824_v34 = vrot.slane %v4711_v49, 5  ;;  %3671 = vmatmul.mubr.bf16.gmra.mrb[4].mxu1 %v3152_v18  ;;  %v5699_v48 = vshrl.u32 %v4719_v63, 16  ;;  %v5700_v28 = vshll.u32 %v4719_v63, 16  ;;  %3799 = vmatmul.mubr.bf16.gmra.mrb[4].mxu0 %v3322_v29  ;;  %v4189_v18 = vld [vmem:[%s5654_s1 + $0x1a0] sm:$0xff]  }
  0x6e   : > { %v561_v30 = vor.u32 %v560_v20, %v556_v17  ;;  %v578_v31 = vshll.u32 %v4729_v52, 16  ;;  %v5701_v49 = vshrl.u32 %v4729_v52, 16  ;;  %v588_v36 = vshll.u32 %v4987_v15, 16  ;;  %3690 = vmatprep.subr.bf16.mxu1 %v4188_v32  ;;  %3815 = vmatpush3.bf16.msra.mxu0 %v4185_v5 }
  0x6f   : > { %v557_v37 = vsel %vm4542_vm4, %v552_v42, %v556_v17  ;;  %v571_v33 = vrot.slane %v5699_v48, 4  ;;  %v574_v0 = vrot.slane %v5700_v28, 5  ;;  %v1825_v55 = vsel %vm4620_vm5, %v1823_v1, %v1824_v34  ;;  %3816 = vmatprep.subr.bf16.mxu0 %v4187_v51 }
  0x70   : > { %v584_v50 = vrot.slane %v5701_v49, 4  ;;  %v562_v19 = vrot.slane %v561_v30, 4  ;;  %v3323_v22 = vcombine.low %v1822_v13, %v1825_v55  ;;  %v3300_v23 = vrot.slane %v4741_v44, 9  ;;  %3691 = vmatpush3.bf16.msra.mxu1 %v4188_v32 }
  0x71   : > { %v575_v12 = vor.u32 %v574_v0, %v571_v33  ;;  %v580_v9 = vrot.slane %v578_v31, 5  ;;  %v590_v20 = vrot.slane %v588_v36, 5  ;;  %v1828_v10 = vrot.slane %v4746_v39, 5  ;;  %3692 = vmatprep.subr.bf16.mxu1 %v4190_v26  ;;  %v4192_v31 = vld [vmem:[%s5654_s1 + $0xb0] sm:$0xff]  }
  0x72   : > { %v1831_v46 = vrot.slane %v4749_v57, 5  ;;  %v567_v21 = vsel %vm4542_vm4, %v562_v19, %v566_v56  ;;  %3802 = vmatprep.mubr.bf16.mxu0 %v3323_v22  ;;  %v5702_v5 = vshrl.u32 %v4782_v35, 16  ;;  %v5703_v42 = vshll.u32 %v4782_v35, 16  ;;  %3817 = vmatpush3.bf16.msra.mxu0 %v4187_v51  ;;  %v4191_v51 = vld [vmem:[%s5654_s1 + $0x1a8] sm:$0xff]  }
  0x73   : > { %v576_v11 = vrot.slane %v575_v12, 4  ;;  %v3153_v13 = vcombine.low %v557_v37, %v567_v21  ;;  %v585_v57 = vor.u32 %v584_v50, %v580_v9  ;;  %v1829_v1 = vsel %vm4620_vm5, %v3300_v23, %v1828_v10  ;;  %3818 = vmatprep.subr.bf16.mxu0 %v4189_v18  ;;  %v4194_v21 = vld [vmem:[%s5654_s1 + $0xb8] sm:$0xff]  }
  0x74   : > { %v595_v29 = vrot.slane %v5702_v5, 4  ;;  %v598_v17 = vrot.slane %v5703_v42, 5  ;;  %v1830_v34 = vrot.slane %v1828_v10, 4  ;;  %v602_v48 = vshll.u32 %v4785_v8, 16  ;;  %3693 = vmatpush3.bf16.msra.mxu1 %v4190_v26 }
  0x75   : > { %v581_v56 = vsel %vm4542_vm4, %v576_v11, %v580_v9  ;;  %v5704_v33 = vshrl.u32 %v4785_v8, 16  ;;  %3674 = vmatprep.mubr.bf16.mxu1 %v3153_v13  ;;  %v586_v37 = vrot.slane %v585_v57, 4  ;;  %v612_v55 = vshll.u32 %v5017_v3, 16  ;;  %v5050_v9 = vld [vmem:[%s4468_s28 + $0x5c] sm:$0x1]  ;;  %v5707_v13 = vld [vmem:[#allocation11_spill] sm:$0xff]  ;;  %3694 = vmatprep.subr.bf16.mxu1 %v4192_v31 }
  0x76   : > { %v599_v30 = vor.u32 %v598_v17, %v595_v29  ;;  %v1832_v0 = vsel %vm4620_vm5, %v1830_v34, %v1831_v46  ;;  %v3301_v32 = vrot.slane %v4795_v25, 9  ;;  %v604_v36 = vrot.slane %v602_v48, 5  ;;  %3819 = vmatpush3.bf16.msra.mxu0 %v4189_v18  ;;  %v5709_v48 = vld [vmem:[#allocation12_spill] sm:$0xff]  ;;  %v5710_v18 = vld [vmem:[#allocation13_spill] sm:$0xff] }
  0x77   : > { %v608_v28 = vrot.slane %v5704_v33, 4  ;;  %v3324_v49 = vcombine.low %v1829_v1, %v1832_v0  ;;  %v1835_v19 = vrot.slane %v4798_v58, 5  ;;  %v591_v22 = vsel %vm4542_vm4, %v586_v37, %v590_v20  ;;  %3820 = vmatprep.subr.bf16.mxu0 %v4191_v51 }
  0x78   : > { %v600_v50 = vrot.slane %v599_v30, 4  ;;  %v614_v12 = vrot.slane %v612_v55, 5  ;;  %v1838_v23 = vrot.slane %v4806_v38, 5  ;;  %v5705_v10 = vshrl.u32 %v4813_v7, 16  ;;  %v4193_v38 = vld [vmem:[%s5654_s1 + $0x1b0] sm:$0xff]   ;;  %3695 = vmatpush3.bf16.msra.mxu1 %v4192_v31 }
  0x79   : > { %v3154_v11 = vcombine.low %v581_v56, %v591_v22  ;;  %3803 = vmatmul.mubr.bf16.gmra.mrb[8].mxu0 %v3324_v49  ;;  %v609_v29 = vor.u32 %v608_v28, %v604_v36  ;;  %v1836_v26 = vsel %vm4620_vm5, %v3301_v32, %v1835_v19  ;;  %v1837_v20 = vrot.slane %v1835_v19, 4  ;;  %v5076_v49 = vld [vmem:[%s4468_s28 + $0x18] sm:$0xf]  ;;  %3696 = vmatprep.subr.bf16.mxu1 %v4194_v21 }
  0x7a   : > { %v619_v46 = vrot.slane %v5705_v10, 4  ;;  %v605_v5 = vsel %vm4542_vm4, %v600_v50, %v604_v36  ;;  %v5706_v42 = vshll.u32 %v4813_v7, 16  ;;  %v626_v57 = vshll.u32 %v5707_v13, 16  ;;  %v5083_v10 = vld [vmem:[%s4468_s28 + $0x1c] sm:$0xf]  ;;  %3821 = vmatpush3.bf16.msra.mxu0 %v4191_v51 }
  0x7b   : > { %v5708_v1 = vshrl.u32 %v5707_v13, 16  ;;  %3675 = vmatmul.mubr.bf16.gmra.mrb[8].mxu1 %v3154_v11  ;;  %v610_v56 = vrot.slane %v609_v29, 4  ;;  %v636_v30 = vshll.u32 %v5050_v9, 16  ;;  %v3302_v33 = vrot.slane %v5709_v48, 9  ;;  %v5711_v29 = vld [vmem:[#allocation8_spill] sm:$0xff]  ;;  %3822 = vmatprep.subr.bf16.mxu0 %v4193_v38 }
  0x7c   : > { %v622_v17 = vrot.slane %v5706_v42, 5  ;;  %v1842_v28 = vrot.slane %v5710_v18, 5  ;;  %v1839_v37 = vsel %vm4620_vm5, %v1837_v20, %v1838_v23  ;;  %v628_v55 = vrot.slane %v626_v57, 5  ;;  %v5088_v23 = vld [vmem:[%s5654_s1 + $0xc0] sm:$0xff]   ;;  %v4195_v20 = vld [vmem:[%s5654_s1 + $0x1b8] sm:$0xff]   ;;  %v5713_v42 = vld [vmem:[#allocation5_spill] sm:$0xff]  ;;  %3697 = vmatpush3.bf16.msra.mxu1 %v4194_v21 }
  0x7d   : > { %v632_v34 = vrot.slane %v5708_v1, 4  ;;  %v1845_v32 = vrot.slane %v4846_v41, 5  ;;  %v615_v50 = vsel %vm4542_vm4, %v610_v56, %v614_v12  ;;  %v3325_v36 = vcombine.low %v1836_v26, %v1839_v37  ;;  %3714 = vmatprep.subr.bf16.mxu1 %v5088_v23  ;;  %v5715_v18 = vld [vmem:[#allocation9_spill] sm:$0xff] }
  0x7e   : > { %v623_v0 = vor.u32 %v622_v17, %v619_v46  ;;  %v638_v19 = vrot.slane %v636_v30, 5  ;;  %v1843_v22 = vsel %vm4620_vm5, %v3302_v33, %v1842_v28  ;;  %v3155_v41 = vcombine.low %v605_v5, %v615_v50  ;;  %3823 = vmatpush3.bf16.msra.mxu0 %v4193_v38  ;;  %v5716_v38 = vld [vmem:[#allocation10_spill] sm:$0xff] }
  0x7f   : > { %v633_v46 = vor.u32 %v632_v34, %v628_v55  ;;  %v1844_v11 = vrot.slane %v1842_v28, 4  ;;  %v5712_v12 = vrot.slane %v5711_v29, 5  ;;  %3806 = vmatprep.mubr.bf16.mxu0 %v3325_v36  ;;  %v5714_v17 = vrot.slane %v5713_v42, 5  ;;  %v4199_v28 = vld [vmem:[%s5654_s1 + $0x1c0] sm:$0xff]   ;;  %3824 = vmatprep.subr.bf16.mxu0 %v4195_v20  ;;  %v4236_v36 = vld [vmem:[%s4468_s28 + $0x18] sm:$0xf] }
  0x80   : > { %v624_v31 = vrot.slane %v623_v0, 4  ;;  %v866_v1 = vrot.slane %v4864_v24, 5  ;;  %3678 = vmatprep.mubr.bf16.mxu1 %v3155_v41  ;;  %v3377_v56 = vcombine.low %v5076_v49, %v5083_v10  ;;  %v873_v24 = vrot.slane %v4868_v61, 5  ;;  %v5117_v0 = vld [vmem:[%s4468_s28 + $0x24] sm:$0xf] }
  0x81   : > { %v872_v26 = vrot.slane %v5712_v12, 4  ;;  %v865_v57 = vrot.slane %v5714_v17, 4  ;;  %v634_v5 = vrot.slane %v633_v46, 4  ;;  %v1846_v34 = vsel %vm4620_vm5, %v1844_v11, %v1845_v32  ;;  %v5123_v32 = vld [vmem:[%s4468_s28 + $0x30] sm:$0xf] }
  0x82   : > { %v629_v51 = vsel %vm4542_vm4, %v624_v31, %v628_v55  ;;  %v3326_v30 = vcombine.low %v1843_v22, %v1846_v34  ;;  %v5120_v55 = vld [vmem:[%s4468_s28 + $0x28] sm:$0xf]  ;;  %v4237_v22 = vld [vmem:[%s4468_s28 + $0x1c] sm:$0xf]  ;;  %v880_v31 = vrot.slane %v4915_v60, 5  ;;  %v2312_v46 = vshrl.u32 %v5076_v49, 16  ;;  %3825 = vmatpush3.bf16.msra.mxu0 %v4195_v20 }
  0x83   : > { %v867_v48 = vsel %vm4620_vm5, %v865_v57, %v866_v1  ;;  %v639_v33 = vsel %vm4542_vm4, %v634_v5, %v638_v19  ;;  %v874_v61 = vsel %vm4620_vm5, %v872_v26, %v873_v24  ;;  %v3167_v19 = vrot.slane %v4236_v36, 9  ;;  %v5132_v29 = vld [vmem:[%s4468_s28 + $0x34] sm:$0xf]  ;;  %v4238_v17 = vld [vmem:[%s4468_s28 + $0x28] sm:$0xf]  ;;  %3842 = vmatprep.subr.bf16.mxu0 %v4199_v28 }
  0x84   : > { %v3189_v21 = vcombine.low %v5715_v18, %v867_v48  ;;  %v3156_v37 = vcombine.low %v629_v51, %v639_v33  ;;  %3807 = vmatmul.mubr.bf16.gmra.mrb[12].mxu0 %v3326_v30  ;;  %v3190_v50 = vcombine.low %v5716_v38, %v874_v61  ;;  %v877_v41 = vrot.slane %v4237_v22, 5  ;;  %v5139_v60 = vld [vmem:[%s4468_s28 + $0x3c] sm:$0xf]  ;;  %v4201_v20 = vld [vmem:[%s5654_s1 + $0x1c8] sm:$0xff]   ;;  %v4239_v33 = vld [vmem:[%s4468_s28 + $0x24] sm:$0xf] }
  0x85   : > { %3826 = vmatprep.mubr.bf16.mxu0 %v3377_v56  ;;  %v2315_v11 = vshll.u32 %v5076_v49, 16  ;;  %v2325_v12 = vshrl.u32 %v5083_v10, 16  ;;  %v3378_v26 = vcombine.low %v5117_v0, %v5120_v55  ;;  %v884_v57 = vrot.slane %v4238_v17, 5  ;;  %5717 = vst [vmem:[#allocation11_spill] sm:$0xff] %v5139_v60  ;;  %v5150_v56 = vld [vmem:[%s4468_s28 + $0x40] sm:$0xf] }
  0x86   : > { %3679 = vmatmul.mubr.bf16.gmra.mrb[12].mxu1 %v3156_v37  ;;  %v879_v42 = vrot.slane %v877_v41, 4  ;;  %v2336_v1 = vshrl.u32 %v5117_v0, 16  ;;  %v2339_v51 = vshll.u32 %v5117_v0, 16  ;;  %v2349_v5 = vshrl.u32 %v5120_v55, 16  ;;  %5718 = vst [vmem:[#allocation12_spill] sm:$0xff] %v5150_v56 }
  0x87   : > { %3698 = vmatprep.mubr.bf16.mxu1 %v3189_v21  ;;  %v878_v34 = vsel %vm4620_vm5, %v3167_v19, %v877_v41  ;;  %v3379_v48 = vcombine.low %v5123_v32, %v5132_v29  ;;  %v2360_v24 = vshrl.u32 %v5123_v32, 16  ;;  %v3168_v18 = vrot.slane %v4239_v33, 9  ;;  %v5164_v41 = vld [vmem:[%s4468_s28 + $0x48] sm:$0xf]  ;;  %v5185_v21 = vld [vmem:[%s4468_s28 + $0x58] sm:$0xf] }
  0x88   : > { %v881_v30 = vsel %vm4620_vm5, %v879_v42, %v880_v31  ;;  %v886_v37 = vrot.slane %v884_v57, 4  ;;  %v887_v61 = vrot.slane %v4926_v2, 5  ;;  %v891_v38 = vrot.slane %v4695_v14, 5  ;;  %v4200_v31 = vld [vmem:[%s5654_s1 + $0xc8] sm:$0xff]   ;;  %v5216_v33 = vld [vmem:[%s4468_s28 + $0x64] sm:$0xf] }
  0x89   : > { %v3191_v36 = vcombine.low %v878_v34, %v881_v30  ;;  %v3169_v22 = vrot.slane %v4690_v16, 9  ;;  %v3380_v42 = vcombine.low %v5139_v60, %v5150_v56  ;;  %v2384_v2 = vshrl.u32 %v5139_v60, 16  ;;  %v5174_v34 = vld [vmem:[%s4468_s28 + $0x4c] sm:$0xf]  ;;  %v5177_v30 = vld [vmem:[%s4468_s28 + $0x54] sm:$0xf] }
  0x8a   : > { %v893_v17 = vrot.slane %v891_v38, 4  ;;  %v894_v14 = vrot.slane %v4955_v4, 5  ;;  %v885_v16 = vsel %vm4620_vm5, %v3168_v18, %v884_v57  ;;  %v898_v19 = vrot.slane %v4729_v52, 5  ;;  %v4203_v57 = vld [vmem:[%s5654_s1 + $0xd0] sm:$0xff]  }
  0x8b   : > { %v888_v4 = vsel %vm4620_vm5, %v886_v37, %v887_v61  ;;  %v901_v18 = vrot.slane %v4987_v15, 5  ;;  %v892_v52 = vsel %vm4620_vm5, %v3169_v22, %v891_v38  ;;  %v3171_v15 = vrot.slane %v4782_v35, 9  ;;  %v5209_v38 = vld [vmem:[%s4468_s28 + $0x60] sm:$0xf]  ;;  %v4207_v35 = vld [vmem:[%s5654_s1 + $0x1d8] sm:$0xff]  }
  0x8c   : > { %3827 = vmatmul.mubr.bf16.vlgmr.msra.gmra.mrb[0].mxu0 %v3378_v26  ;;  %v900_v61 = vrot.slane %v898_v19, 4  ;;  %v3192_v22 = vcombine.low %v885_v16, %v888_v4  ;;  %v3381_v37 = vcombine.low %v5164_v41, %v5174_v34  ;;  %v3172_v16 = vrot.slane %v4813_v7, 9 }
  0x8d   : > { %3843 = vmatpush3.bf16.msra.mxu0 %v4199_v28  ;;  %3830 = vmatprep.mubr.bf16.mxu0 %v3379_v48  ;;  %v4205_v28 = vld [vmem:[%s5654_s1 + $0x1d0] sm:$0xff]   ;;  %v3170_v48 = vrot.slane %v4719_v63, 9  ;;  %v895_v63 = vsel %vm4620_vm5, %v893_v17, %v894_v14  ;;  %v912_v4 = vrot.slane %v5707_v13, 5  ;;  %v915_v26 = vrot.slane %v5050_v9, 5  ;;  %v4211_v13 = vld [vmem:[%s5654_s1 + $0x1e0] sm:$0xff]  }
  0x8e   : > { %3699 = vmatmul.mubr.bf16.vlgmr.msra.gmra.mrb[0].mxu1 %v3190_v50  ;;  %3844 = vmatprep.subr.bf16.mxu0 %v4201_v20  ;;  %v3382_v50 = vcombine.low %v5177_v30, %v5185_v21  ;;  %v3193_v14 = vcombine.low %v892_v52, %v895_v63  ;;  %v3383_v7 = vcombine.low %v5209_v38, %v5216_v33  ;;  %v5259_v63 = vld [vmem:[%s4468_s28 + $0x20] sm:$0x1]  ;;  %v2737_v54 = vrot.slane %v5132_v29, 5 }
  0x8f   : > { %3715 = vmatpush3.bf16.msra.mxu1 %v5088_v23  ;;  %3702 = vmatprep.mubr.bf16.mxu1 %v3191_v36  ;;  %v905_v23 = vrot.slane %v4785_v8, 5  ;;  %v908_v36 = vrot.slane %v5017_v3, 5  ;;  %v5223_v8 = vsel %vm4620_vm5, %v3170_v48, %v898_v19  ;;  %v5227_v3 = vsel %vm4620_vm5, %v900_v61, %v901_v18  ;;  %v4206_v19 = vld [vmem:[%s5654_s1 + $0xd8] sm:$0xff]  }
  0x90   : > { %3716 = vmatprep.subr.bf16.mxu1 %v4200_v31  ;;  %v3194_v9 = vcombine.low %v5223_v8, %v5227_v3  ;;  %v5256_v52 = vsel %vm4620_vm5, %v3172_v16, %v912_v4  ;;  %v914_v61 = vrot.slane %v912_v4, 4  ;;  %v4209_v8 = vld [vmem:[%s5654_s1 + $0xe0] sm:$0xff]   ;;  %v2341_v3 = vrot.slane %v2339_v51, 5  ;;  %v4212_v51 = vld [vmem:[%s5654_s1 + $0xe8] sm:$0xff]  }
  0x91   : > { %3845 = vmatpush3.bf16.msra.mxu0 %v4201_v20  ;;  %v5231_v20 = vsel %vm4620_vm5, %v3171_v15, %v905_v23  ;;  %v907_v17 = vrot.slane %v905_v23, 4  ;;  %v5262_v15 = vld [vmem:[%s4468_s28 + $0x2c] sm:$0x1]  ;;  %v2321_v23 = vshll.u32 %v5083_v10, 16 }
  0x92   : > { %3846 = vmatprep.subr.bf16.mxu0 %v4205_v28  ;;  %v2355_v16 = vshll.u32 %v5262_v15, 16  ;;  %v4213_v4 = vld [vmem:[%s5654_s1 + $0x1e8] sm:$0xff]  }
  0x93   : > { %3717 = vmatpush3.bf16.msra.mxu1 %v4200_v31  ;;  %v5243_v31 = vsel %vm4620_vm5, %v907_v17, %v908_v36  ;;  %v2327_v36 = vrot.slane %v2325_v12, 4  ;;  %v2345_v17 = vshll.u32 %v5120_v55, 16  ;;  %v5354_v12 = vld [vmem:[%s4468_s28 + $0x50] sm:$0x1] }
  0x94   : > { %3718 = vmatprep.subr.bf16.mxu1 %v4203_v57  ;;  %3831 = vmatmul.mubr.bf16.gmra.mrb[4].mxu0 %v3380_v42  ;;  %v3195_v42 = vcombine.low %v5231_v20, %v5243_v31  ;;  %v2323_v20 = vrot.slane %v2321_v23, 5 }
  0x95   : > { %3847 = vmatpush3.bf16.msra.mxu0 %v4205_v28  ;;  %3834 = vmatprep.mubr.bf16.mxu0 %v3381_v37  ;;  %v2314_v28 = vrot.slane %v2312_v46, 4  ;;  %v2317_v37 = vrot.slane %v2315_v11, 5  ;;  %v2331_v46 = vshll.u32 %v5259_v63, 16  ;;  %v2338_v11 = vrot.slane %v2336_v1, 4 }
  0x96   : > { %3703 = vmatmul.mubr.bf16.gmra.mrb[4].mxu1 %v3192_v22  ;;  %3848 = vmatprep.subr.bf16.mxu0 %v4207_v35  ;;  %v5276_v22 = vsel %vm4620_vm5, %v914_v61, %v915_v26  ;;  %v2351_v1 = vrot.slane %v2349_v5, 4  ;;  %v5295_v61 = vrot.slane %v2345_v17, 5  ;;  %v2362_v5 = vrot.slane %v2360_v24, 4 }
  0x97   : > { %3719 = vmatpush3.bf16.msra.mxu1 %v4203_v57  ;;  %3706 = vmatprep.mubr.bf16.mxu1 %v3193_v14  ;;  %v2318_v57 = vor.u32 %v2317_v37, %v2314_v28  ;;  %v2333_v26 = vrot.slane %v2331_v46, 5  ;;  %v2342_v14 = vor.u32 %v2341_v3, %v2338_v11  ;;  %v5298_v28 = vld [vmem:[%s4468_s28 + $0x38] sm:$0x1]  ;;  %v5305_v46 = vld [vmem:[%s4468_s28 + $0x6c] sm:$0xf]  ;;  %v5719_v3 = vshll.u32 %v5123_v32, 16 }
  0x98   : > { %3720 = vmatprep.subr.bf16.mxu1 %v4206_v19  ;;  %v5308_v11 = vld [vmem:[%s4468_s28 + $0x70] sm:$0xf]  ;;  %v5720_v17 = vshrl.u32 %v5132_v29, 16 }
  0x99   : > { %3849 = vmatpush3.bf16.msra.mxu0 %v4207_v35  ;;  %v2319_v31 = vrot.slane %v2318_v57, 4  ;;  %v2328_v35 = vor.u32 %v2327_v36, %v2323_v20  ;;  %v2365_v57 = vrot.slane %v5719_v3, 5  ;;  %v2369_v36 = vshll.u32 %v5132_v29, 16 }
  0x9a   : > { %3850 = vmatprep.subr.bf16.mxu0 %v4211_v13  ;;  %v2375_v23 = vrot.slane %v5720_v17, 4  ;;  %v2343_v37 = vrot.slane %v2342_v14, 4  ;;  %v2379_v3 = vshll.u32 %v5298_v28, 16  ;;  %v3426_v29 = vrot.slane %v5117_v0, 9 }
  0x9b   : > { %3721 = vmatpush3.bf16.msra.mxu1 %v4206_v19  ;;  %v2329_v24 = vrot.slane %v2328_v35, 4  ;;  %v2352_v19 = vor.u32 %v2351_v1, %v5295_v61  ;;  %v2366_v18 = vor.u32 %v2365_v57, %v2362_v5  ;;  %v5319_v48 = vrot.slane %v2369_v36, 5  ;;  %v4217_v1 = vld [vmem:[%s5654_s1 + $0x1f0] sm:$0xff]  }
  0x9c   : > { %3722 = vmatprep.subr.bf16.mxu1 %v4209_v8  ;;  %3835 = vmatmul.mubr.bf16.gmra.mrb[8].mxu0 %v3382_v50  ;;  %v4215_v50 = vld [vmem:[%s5654_s1 + $0xf0] sm:$0xff]   ;;  %v2357_v35 = vrot.slane %v2355_v16, 5  ;;  %v2386_v5 = vrot.slane %v2384_v2, 4  ;;  %v5721_v57 = vshll.u32 %v5139_v60, 16  ;;  %v5722_v16 = vshrl.u32 %v5150_v56, 16 }
  0x9d   : > { %3851 = vmatpush3.bf16.msra.mxu0 %v4211_v13  ;;  %3838 = vmatprep.mubr.bf16.mxu0 %v3383_v7  ;;  %v2324_v13 = vsel %vm4542_vm4, %v2319_v31, %v2323_v20  ;;  %v2334_v7 = vsel %vm4542_vm4, %v2329_v24, %v2333_v26  ;;  %v2353_v14 = vrot.slane %v2352_v19, 4  ;;  %v3384_v20 = vcombine.low %v5305_v46, %v5308_v11  ;;  %v5349_v19 = vld [vmem:[%s4468_s28 + $0x44] sm:$0x1] }
  0x9e   : > { %3707 = vmatmul.mubr.bf16.gmra.mrb[8].mxu1 %v3194_v9  ;;  %3852 = vmatprep.subr.bf16.mxu0 %v4213_v4  ;;  %v2376_v9 = vor.u32 %v2375_v23, %v5319_v48  ;;  %v2389_v36 = vrot.slane %v5721_v57, 5  ;;  %v2393_v26 = vshll.u32 %v5150_v56, 16  ;;  %v2399_v31 = vrot.slane %v5722_v16, 4  ;;  %5723 = vst [vmem:[#allocation13_spill] sm:$0xff] %v5349_v19 }
  0x9f   : > { %3723 = vmatpush3.bf16.msra.mxu1 %v4209_v8  ;;  %3710 = vmatprep.mubr.bf16.mxu1 %v3195_v42  ;;  %v4219_v42 = vld [vmem:[%s5654_s1 + $0x1f8] sm:$0xff]   ;;  %v3409_v8 = vcombine.low %v2324_v13, %v2334_v7  ;;  %v2348_v2 = vsel %vm4542_vm4, %v2343_v37, %v5295_v61  ;;  %v2367_v23 = vrot.slane %v2366_v18, 4  ;;  %v2381_v24 = vrot.slane %v2379_v3, 5 }
  0xa0   : > { %3724 = vmatprep.subr.bf16.mxu1 %v4212_v51  ;;  %v2377_v17 = vrot.slane %v2376_v9, 4  ;;  %v5351_v57 = vrot.slane %v2393_v26, 5  ;;  %v5725_v60 = vshll.u32 %v5164_v41, 16  ;;  %v4218_v18 = vld [vmem:[%s5654_s1 + $0xf8] sm:$0xff]   ;;  %v2358_v61 = vsel %vm4542_vm4, %v2353_v14, %v2357_v35 }
  0xa1   : > { %3853 = vmatpush3.bf16.msra.mxu0 %v4213_v4  ;;  %v5724_v4 = vshrl.u32 %v5164_v41, 16  ;;  %v2390_v37 = vor.u32 %v2389_v36, %v2386_v5  ;;  %v2417_v3 = vshll.u32 %v5174_v34, 16  ;;  %v5726_v7 = vshrl.u32 %v5174_v34, 16 }
  0xa2   : > { %3854 = vmatprep.subr.bf16.mxu0 %v4217_v1  ;;  %v2413_v13 = vrot.slane %v5725_v60, 5  ;;  %v2459_v26 = vshll.u32 %v5209_v38, 16  ;;  %v2400_v60 = vor.u32 %v2399_v31, %v5351_v57  ;;  %v2427_v35 = vshll.u32 %v5354_v12, 16 }
  0xa3   : > { %v2410_v16 = vrot.slane %v5724_v4, 4  ;;  %3725 = vmatpush3.bf16.msra.mxu1 %v4212_v51  ;;  %v2423_v9 = vrot.slane %v5726_v7, 4  ;;  %v2403_v51 = vshll.u32 %v5349_v19, 16  ;;  %v2469_v4 = vshrl.u32 %v5216_v33, 16 }
  0xa4   : > { %3726 = vmatprep.subr.bf16.mxu1 %v4215_v50  ;;  %3839 = vmatmul.mubr.bf16.gmra.mrb[12].mxu0 %v3384_v20  ;;  %v2419_v14 = vrot.slane %v2417_v3, 5  ;;  %v5727_v5 = vcombine.low %v5256_v52, %v5276_v22  ;;  %v3410_v36 = vcombine.low %v2348_v2, %v2358_v61  ;;  %v4222_v20 = vld [vmem:[%s5654_s1 + $0x200] sm:$0xff]   ;;  %v2372_v31 = vsel %vm4542_vm4, %v2367_v23, %v5319_v48 }
  0xa5   : > { %3855 = vmatpush3.bf16.msra.mxu0 %v4217_v1  ;;  %3858 = vmatprep.mubr.bf16.mxu0 %v3409_v8  ;;  %v2414_v56 = vor.u32 %v2413_v13, %v2410_v16  ;;  %v2382_v1 = vsel %vm4542_vm4, %v2377_v17, %v2381_v24  ;;  %v2441_v8 = vshll.u32 %v5185_v21, 16  ;;  %v5728_v16 = vld [vmem:[#allocation6_spill] sm:$0xff]  ;;  %v5729_v13 = vld [vmem:[#allocation7_spill] sm:$0xff]  ;;  %v2391_v22 = vrot.slane %v2390_v37, 4 }
  0xa6   : > { %3711 = vmatmul.mubr.bf16.gmra.mrb[12].mxu1 %v5727_v5  ;;  %3856 = vmatprep.subr.bf16.mxu0 %v4219_v42  ;;  %v5730_v52 = vcombine.low %v5728_v16, %v5729_v13  ;;  %v2424_v2 = vor.u32 %v2423_v9, %v2419_v14  ;;  %v5731_v61 = vshrl.u32 %v5177_v30, 16  ;;  %v5732_v7 = vshll.u32 %v5177_v30, 16 }
  0xa7   : > { %3727 = vmatpush3.bf16.msra.mxu1 %v4215_v50  ;;  %v2401_v48 = vrot.slane %v2400_v60, 4  ;;  %v2405_v23 = vrot.slane %v2403_v51, 5  ;;  %v5392_v24 = vrot.slane %v2441_v8, 5  ;;  %v5733_v50 = vshrl.u32 %v5185_v21, 16 }
  0xa8   : > { %3730 = vmatprep.mubr.bf16.mxu1 %v5730_v52  ;;  %v2434_v3 = vrot.slane %v5731_v61, 4  ;;  %v2437_v5 = vrot.slane %v5732_v7, 5  ;;  %3728 = vmatprep.subr.bf16.mxu1 %v4218_v18  ;;  %v3411_v16 = vcombine.low %v2372_v31, %v2382_v1  ;;  %v2415_v13 = vrot.slane %v2414_v56, 4  ;;  %v5397_v52 = vld [vmem:[%s4468_s28 + $0x5c] sm:$0x1]  ;;  %v4223_v61 = vld [vmem:[%s5654_s1 + $0x208] sm:$0xff]  }
  0xa9   : > { %v2447_v17 = vrot.slane %v5733_v50, 4  ;;  %3857 = vmatpush3.bf16.msra.mxu0 %v4219_v42  ;;  %v2425_v37 = vrot.slane %v2424_v2, 4  ;;  %v2429_v9 = vrot.slane %v2427_v35, 5  ;;  %v5734_v60 = vshrl.u32 %v5209_v38, 16  ;;  %v5410_v35 = vld [vmem:[%s4468_s28 + $0x68] sm:$0x1] }
  0xaa   : > { %3874 = vmatprep.subr.bf16.mxu0 %v4222_v20  ;;  %v2461_v8 = vrot.slane %v2459_v26, 5  ;;  %v2465_v7 = vshll.u32 %v5216_v33, 16  ;;  %v2480_v50 = vshrl.u32 %v5305_v46, 16  ;;  %v2396_v56 = vsel %vm4542_vm4, %v2391_v22, %v5351_v57  ;;  %v4226_v22 = vld [vmem:[%s5654_s1 + $0x210] sm:$0xff]  }
  0xab   : > { %v2458_v51 = vrot.slane %v5734_v60, 4  ;;  %3729 = vmatpush3.bf16.msra.mxu1 %v4218_v18  ;;  %v2438_v42 = vor.u32 %v2437_v5, %v2434_v3  ;;  %v2471_v31 = vrot.slane %v2469_v4, 4  ;;  %v2406_v1 = vsel %vm4542_vm4, %v2401_v48, %v2405_v23 }
  0xac   : > { %3859 = vmatmul.mubr.bf16.vlgmr.msra.gmra.mrb[0].mxu0 %v3410_v36  ;;  %3906 = vmatprep.subr.bf16.mxu1 %v4222_v20  ;;  %v2448_v26 = vor.u32 %v2447_v17, %v5392_v24  ;;  %v2451_v2 = vshll.u32 %v5397_v52, 16  ;;  %v2467_v60 = vrot.slane %v2465_v7, 5  ;;  %v2483_v18 = vshll.u32 %v5305_v46, 16 }
  0xad   : > { %v2493_v19 = vshrl.u32 %v5308_v11, 16  ;;  %3875 = vmatpush3.bf16.msra.mxu0 %v4222_v20  ;;  %3862 = vmatprep.mubr.bf16.mxu0 %v3411_v16  ;;  %v2420_v57 = vsel %vm4542_vm4, %v2415_v13, %v2419_v14  ;;  %v2430_v4 = vsel %vm4542_vm4, %v2425_v37, %v2429_v9  ;;  %v5735_v36 = vcombine.low %v4538_v53, %v4551_v59 }
  0xae   : > { %3876 = vmatprep.subr.bf16.mxu0 %v4223_v61  ;;  %v2462_v3 = vor.u32 %v2461_v8, %v2458_v51  ;;  %v2472_v5 = vor.u32 %v2471_v31, %v2467_v60  ;;  %v2475_v48 = vshll.u32 %v5410_v35, 16  ;;  %v2489_v23 = vshll.u32 %v5308_v11, 16 }
  0xaf   : > { %3731 = vmatmul.mubr.bf16.vlgmr.msra.gmra.mrb[0].mxu1 %v5735_v36  ;;  %v5736_v14 = vcombine.low %v4600_v43, %v4606_v47  ;;  %v3412_v17 = vcombine.low %v2396_v56, %v2406_v1  ;;  %v3413_v53 = vcombine.low %v2420_v57, %v2430_v4  ;;  %v2439_v59 = vrot.slane %v2438_v42, 4  ;;  %v5437_v56 = vld [vmem:[%s4468_s28 + $0x74] sm:$0x1] }
  0xb0   : > { %3914 = vmatpush3.bf16.msra.mxu1 %v4222_v20  ;;  %v2449_v16 = vrot.slane %v2448_v26, 4  ;;  %v2453_v13 = vrot.slane %v2451_v2, 5  ;;  %v2482_v37 = vrot.slane %v2480_v50, 4  ;;  %v2485_v9 = vrot.slane %v2483_v18, 5  ;;  %v4227_v20 = vld [vmem:[%s5654_s1 + $0x218] sm:$0xff]  }
  0xb1   : > { %3734 = vmatprep.mubr.bf16.mxu1 %v5736_v14  ;;  %3907 = vmatprep.subr.bf16.mxu1 %v4223_v61  ;;  %v2491_v51 = vrot.slane %v2489_v23, 5  ;;  %v2495_v8 = vrot.slane %v2493_v19, 4  ;;  %v2463_v7 = vrot.slane %v2462_v3, 4  ;;  %v2473_v43 = vrot.slane %v2472_v5, 4 }
  0xb2   : > { %3877 = vmatpush3.bf16.msra.mxu0 %v4223_v61  ;;  %v2477_v47 = vrot.slane %v2475_v48, 5  ;;  %v2444_v50 = vsel %vm4542_vm4, %v2439_v59, %v5392_v24  ;;  %v2454_v19 = vsel %vm4542_vm4, %v2449_v16, %v2453_v13  ;;  %v2486_v42 = vor.u32 %v2485_v9, %v2482_v37  ;;  %v4240_v9 = vld [vmem:[%s4468_s28 + $0x60] sm:$0xf] }
  0xb3   : > { %3878 = vmatprep.subr.bf16.mxu0 %v4226_v22  ;;  %v2496_v31 = vor.u32 %v2495_v8, %v2491_v51  ;;  %v2499_v1 = vshll.u32 %v5437_v56, 16  ;;  %v5737_v26 = vcombine.low %v4652_v40, %v4655_v45  ;;  %v2468_v24 = vsel %vm4542_vm4, %v2463_v7, %v2467_v60  ;;  %v4231_v60 = vld [vmem:[%s5654_s1 + $0x228] sm:$0xff]  }
  0xb4   : > { %3915 = vmatpush3.bf16.msra.mxu1 %v4223_v61  ;;  %3863 = vmatmul.mubr.bf16.gmra.mrb[4].mxu0 %v3412_v17  ;;  %v4230_v61 = vld [vmem:[%s5654_s1 + $0x220] sm:$0xff]   ;;  %v2478_v2 = vsel %vm4542_vm4, %v2473_v43, %v2477_v47  ;;  %v2723_v18 = vrot.slane %v5083_v10, 5  ;;  %v5738_v57 = vcombine.low %v4700_v6, %v4708_v27  ;;  %v3414_v40 = vcombine.low %v2444_v50, %v2454_v19 }
  0xb5   : > { %3908 = vmatprep.subr.bf16.mxu1 %v4226_v22  ;;  %3866 = vmatprep.mubr.bf16.mxu0 %v3413_v53  ;;  %v2751_v45 = vrot.slane %v5174_v34, 5  ;;  %v3415_v4 = vcombine.low %v2468_v24, %v2478_v2  ;;  %v2487_v36 = vrot.slane %v2486_v42, 4  ;;  %v2497_v3 = vrot.slane %v2496_v31, 4 }
  0xb6   : > { %3879 = vmatpush3.bf16.msra.mxu0 %v4226_v22  ;;  %v2501_v5 = vrot.slane %v2499_v1, 5  ;;  %v3425_v10 = vrot.slane %v5076_v49, 9  ;;  %v2726_v6 = vrot.slane %v5259_v63, 5  ;;  %v3429_v27 = vrot.slane %v5164_v41, 9  ;;  %v4234_v41 = vld [vmem:[%s5654_s1 + $0x230] sm:$0xff]  }
  0xb7   : > { %3735 = vmatmul.mubr.bf16.gmra.mrb[4].mxu1 %v5737_v26  ;;  %3880 = vmatprep.subr.bf16.mxu0 %v4227_v20  ;;  %v2753_v34 = vrot.slane %v2751_v45, 4  ;;  %v2754_v48 = vrot.slane %v5354_v12, 5  ;;  %v2492_v23 = vsel %vm4542_vm4, %v2487_v36, %v2491_v51  ;;  %v2730_v49 = vrot.slane %v5120_v55, 5  ;;  %v4235_v51 = vld [vmem:[%s5654_s1 + $0x238] sm:$0xff]  }
  0xb8   : > { %3916 = vmatpush3.bf16.msra.mxu1 %v4226_v22  ;;  %3738 = vmatprep.mubr.bf16.mxu1 %v5738_v57  ;;  %v2725_v22 = vrot.slane %v2723_v18, 4  ;;  %v2502_v14 = vsel %vm4542_vm4, %v2497_v3, %v2501_v5  ;;  %v5739_v63 = vcombine.low %v4741_v44, %v4746_v39  ;;  %v2724_v12 = vsel %vm4620_vm5, %v3425_v10, %v2723_v18  ;;  %v5742_v18 = vld [vmem:[#allocation11_spill] sm:$0xff] }
  0xb9   : > { %3909 = vmatprep.subr.bf16.mxu1 %v4227_v20  ;;  %v2758_v55 = vrot.slane %v5185_v21, 5  ;;  %v5740_v44 = vcombine.low %v4795_v25, %v4798_v58  ;;  %v3416_v39 = vcombine.low %v2492_v23, %v2502_v14  ;;  %v2752_v53 = vsel %vm4620_vm5, %v3429_v27, %v2751_v45  ;;  %v4241_v25 = vld [vmem:[%s4468_s28 + $0x64] sm:$0xf]  ;;  %v5743_v45 = vld [vmem:[#allocation13_spill] sm:$0xff]  ;;  %s4246_s28 = sshll.u32 %s4338_s9, 4  ;;  %s4247_s28 = int_to_ptr.vmem [resolvable:$false] %s4246_s28 }
  0xba   : > { %3881 = vmatpush3.bf16.msra.mxu0 %v4227_v20  ;;  %v2727_v17 = vsel %vm4620_vm5, %v2725_v22, %v2726_v6  ;;  %v2755_v59 = vsel %vm4620_vm5, %v2753_v34, %v2754_v48  ;;  %v2765_v16 = vrot.slane %v5216_v33, 5  ;;  %v2732_v21 = vrot.slane %v2730_v49, 4  ;;  %s4248_s10 = scalar_lea.vmem %s4247_s28, 4096  ;;  %p4249_p2 = scmp.lt.s32.totalorder %s5593_s16, %s4247_s28 }
  0xbb   : > { %3882 = vmatprep.subr.bf16.mxu0 %v4230_v61  ;;  %v3449_v13 = vcombine.low %v2724_v12, %v2727_v17  ;;  %v2733_v37 = vrot.slane %v5262_v15, 5  ;;  %v3254_v58 = vcombine.low %v4240_v9, %v4241_v25  ;;  %v3427_v8 = vrot.slane %v5123_v32, 9  ;;  %p4250_p4 = scmp.lt.s32.totalorder %s4248_s10, %s4242_s8 }
  0xbc   : > { %3917 = vmatpush3.bf16.msra.mxu1 %v4227_v20  ;;  %3867 = vmatmul.mubr.bf16.gmra.mrb[8].mxu0 %v3414_v40  ;;  %v2739_v20 = vrot.slane %v2737_v54, 4  ;;  %v2740_v33 = vrot.slane %v5298_v28, 5  ;;  %v3430_v7 = vrot.slane %v5177_v30, 9  ;;  %v2760_v43 = vrot.slane %v2758_v55, 4  ;;  %v5741_v28 = vld [vmem:[#allocation12_spill] sm:$0xff] }
  0xbd   : > { %3910 = vmatprep.subr.bf16.mxu1 %v4230_v61  ;;  %3870 = vmatprep.mubr.bf16.mxu0 %v3415_v4  ;;  %v2761_v0 = vrot.slane %v5397_v52, 5  ;;  %v3453_v15 = vcombine.low %v2752_v53, %v2755_v59  ;;  %v3431_v47 = vrot.slane %v5209_v38, 9  ;;  %v2767_v50 = vrot.slane %v2765_v16, 4  ;;  %p4251_p5 = por %p4250_p4, %p4249_p2 }
  0xbe   : > { %3883 = vmatpush3.bf16.msra.mxu0 %v4230_v61  ;;  %v2768_v19 = vrot.slane %v5410_v35, 5  ;;  %v2731_v32 = vsel %vm4620_vm5, %v3426_v29, %v2730_v49  ;;  %v2734_v30 = vsel %vm4620_vm5, %v2732_v21, %v2733_v37  ;;  %v2744_v42 = vrot.slane %v5741_v28, 5 }
  0xbf   : > { %3739 = vmatmul.mubr.bf16.gmra.mrb[8].mxu1 %v5739_v63  ;;  %3884 = vmatprep.subr.bf16.mxu0 %v4231_v60  ;;  %v2738_v52 = vsel %vm4620_vm5, %v3427_v8, %v2737_v54  ;;  %v2741_v38 = vsel %vm4620_vm5, %v2739_v20, %v2740_v33  ;;  %v2759_v35 = vsel %vm4620_vm5, %v3430_v7, %v2758_v55  ;;  %v2772_v1 = vrot.slane %v5308_v11, 5  ;;  %p4252_p6 = pnand %p4251_p5, %p4245_p1 }
  0xc0   : > { %3918 = vmatpush3.bf16.msra.mxu1 %v4230_v61  ;;  %3742 = vmatprep.mubr.bf16.mxu1 %v5740_v44  ;;  %v2762_v31 = vsel %vm4620_vm5, %v2760_v43, %v2761_v0  ;;  %v3450_v26 = vcombine.low %v2731_v32, %v2734_v30  ;;  %v2766_v61 = vsel %vm4620_vm5, %v3431_v47, %v2765_v16  ;;  %v3428_v57 = vrot.slane %v5742_v18, 9 }
  0xc1   : > { %3911 = vmatprep.subr.bf16.mxu1 %v4231_v60  ;;  %v2769_v24 = vsel %vm4620_vm5, %v2767_v50, %v2768_v19  ;;  %v3451_v2 = vcombine.low %v2738_v52, %v2741_v38  ;;  %v2746_v40 = vrot.slane %v2744_v42, 4  ;;  %v2747_v4 = vrot.slane %v5743_v45, 5 }
  0xc2   : > { %3885 = vmatpush3.bf16.msra.mxu0 %v4231_v60  ;;  %v3454_v36 = vcombine.low %v2759_v35, %v2762_v31  ;;  %v3455_v3 = vcombine.low %v2766_v61, %v2769_v24  ;;  %v3432_v11 = vrot.slane %v5305_v46, 9  ;;  %v2774_v5 = vrot.slane %v2772_v1, 4 }
  0xc3   : > { %3886 = vmatprep.subr.bf16.mxu0 %v4234_v41  ;;  %v2745_v10 = vsel %vm4620_vm5, %v3428_v57, %v2744_v42  ;;  %v2748_v22 = vsel %vm4620_vm5, %v2746_v40, %v2747_v4 }
  0xc4   : > { %3919 = vmatpush3.bf16.msra.mxu1 %v4231_v60  ;;  %3871 = vmatmul.mubr.bf16.gmra.mrb[12].mxu0 %v3416_v39  ;;  %v2775_v60 = vrot.slane %v5437_v56, 5  ;;  %v2773_v6 = vsel %vm4620_vm5, %v3432_v11, %v2772_v1  ;;  %v3452_v46 = vcombine.low %v2745_v10, %v2748_v22 }
  0xc5   : > { %3912 = vmatprep.subr.bf16.mxu1 %v4234_v41  ;;  %3890 = vmatprep.mubr.bf16.mxu0 %v3449_v13 }
  0xc6   : > { %3887 = vmatpush3.bf16.msra.mxu0 %v4234_v41  ;;  %v2776_v27 = vsel %vm4620_vm5, %v2774_v5, %v2775_v60 }
  0xc7   : > { %3743 = vmatmul.mubr.bf16.gmra.mrb[12].mxu1 %v3254_v58  ;;  %3888 = vmatprep.subr.bf16.mxu0 %v4235_v51  ;;  %v3456_v34 = vcombine.low %v2773_v6, %v2776_v27 }
  0xc8   : > { %3920 = vmatpush3.bf16.msra.mxu1 %v4234_v41  ;;  %3898 = vmatprep.mubr.bf16.mxu1 %v3453_v15 }
  0xc9   : > { %3913 = vmatprep.subr.bf16.mxu1 %v4235_v51 }
  0xca   : > { %3889 = vmatpush3.bf16.msra.mxu0 %v4235_v51 }
  0xcc   : > { %3921 = vmatpush3.bf16.msra.mxu1 %v4235_v51 }
  0xcd   : > { %3891 = vmatmul.mubr.bf16.vlgmr.msra.gmra.mrb[0].mxu0 %v3450_v26 }
  0xce   : > { %3894 = vmatprep.mubr.bf16.mxu0 %v3451_v2 }
  0xcf   : > { %3899 = vmatmul.mubr.bf16.vlgmr.msra.gmra.mrb[16].mxu1 %v3454_v36 }
  0xd0   : > { %3902 = vmatprep.mubr.bf16.mxu1 %v3455_v3 }
  0xd5   : > { %3895 = vmatmul.mubr.bf16.gmra.mrb[4].mxu0 %v3452_v46 }
  0xd7   : > { %3903 = vmatmul.mubr.bf16.gmra.mrb[20].mxu1 %v3456_v34 }
 0x182   : > { %v3732_v56 = vpop.f32.mrb[0].mxu1 }
 0x183   : > { %v1302_v48 = vpop.f32.mrb[1].mxu1  ;;  %v3922_v52 = vadd.f32 %v3732_v56, %v5546_v62 }
 0x184   : > { %v3733_v23 = vpop.f32.mrb[2].mxu1  ;;  %v3924_v35 = vadd.f32 %v5546_v62, %v1302_v48 }
 0x185   : > { %v1305_v14 = vpop.f32.mrb[3].mxu1  ;;  %v3926_v26 = vadd.f32 %v3733_v23, %v5546_v62 }
 0x186   : > { %v3928_v2 = vadd.f32 %v5546_v62, %v1305_v14 }
 0x18a   : > { %v5535_v49 = vpop.f32.mrb[4].mxu1 }
 0x18b   : > { %v5537_v63 = vpop.f32.mrb[5].mxu1  ;;  %v3930_v27 = vadd.f32 %v5535_v49, %v5546_v62 }
 0x18c   : > { %v5539_v41 = vpop.f32.mrb[6].mxu1  ;;  %v3932_v46 = vadd.f32 %v5546_v62, %v5537_v63 }
 0x18d   : > { %v5541_v12 = vpop.f32.mrb[7].mxu1  ;;  %v3934_v56 = vadd.f32 %v5539_v41, %v5546_v62 }
 0x18e   : > { %v3936_v14 = vadd.f32 %v5546_v62, %v5541_v12 }
 0x18f   : > { %v3868_v17 = vpop.f32.mrb[8].mxu0 }
 0x190   : > { %v2666_v54 = vpop.f32.mrb[9].mxu0 }
 0x191   : > { %v3869_v44 = vpop.f32.mrb[10].mxu0 }
 0x192   : > { %v3740_v55 = vpop.f32.mrb[8].mxu1  ;;  %v2669_v59 = vpop.f32.mrb[11].mxu0 }
 0x193   : > { %v3938_v39 = vadd.f32 %v3740_v55, %v5546_v62  ;;  %v1334_v53 = vpop.f32.mrb[9].mxu1 }
 0x194   : > { %v3941_v16 = vadd.f32 %v5546_v62, %v1334_v53  ;;  %v3741_v13 = vpop.f32.mrb[10].mxu1 }
 0x195   : > { %v3939_v29 = vadd.f32 %v3938_v39, %v3868_v17  ;;  %v3944_v21 = vadd.f32 %v3741_v13, %v5546_v62  ;;  %v1337_v37 = vpop.f32.mrb[11].mxu1 }
 0x196   : > { %v3942_v9 = vadd.f32 %v3941_v16, %v2666_v54  ;;  %v3947_v25 = vadd.f32 %v5546_v62, %v1337_v37 }
 0x197   : > { %v3945_v58 = vadd.f32 %v3944_v21, %v3869_v44  ;;  %v3872_v8 = vpop.f32.mrb[12].mxu0 }
 0x198   : > { %v3948_v51 = vadd.f32 %v3947_v25, %v2669_v59  ;;  %v2682_v20 = vpop.f32.mrb[13].mxu0 }
 0x199   : > { %v3873_v7 = vpop.f32.mrb[14].mxu0 }
 0x19a   : > { %v3744_v33 = vpop.f32.mrb[12].mxu1  ;;  %v2685_v15 = vpop.f32.mrb[15].mxu0 }
 0x19b   : > { %v3950_v43 = vadd.f32 %v3744_v33, %v5546_v62  ;;  %v1350_v0 = vpop.f32.mrb[13].mxu1 }
 0x19c   : > { %v3953_v47 = vadd.f32 %v5546_v62, %v1350_v0  ;;  %v3745_v50 = vpop.f32.mrb[14].mxu1 }
 0x19d   : > { %v3951_v19 = vadd.f32 %v3950_v43, %v3872_v8  ;;  %v3956_v32 = vadd.f32 %v3745_v50, %v5546_v62  ;;  %v1353_v30 = vpop.f32.mrb[15].mxu1 }
 0x19e   : > { %v3954_v28 = vadd.f32 %v3953_v47, %v2682_v20  ;;  %v3959_v42 = vadd.f32 %v5546_v62, %v1353_v30 }
 0x19f   : > { %v3957_v38 = vadd.f32 %v3956_v32, %v3873_v7 }
 0x1a0   : > { %v3960_v31 = vadd.f32 %v3959_v42, %v2685_v15  ;;  %v3892_v1 = vpop.f32.mrb[0].mxu0 }
 0x1a1   : > { %v3923_v61 = vadd.f32 %v3922_v52, %v3892_v1  ;;  %v2908_v24 = vpop.f32.mrb[1].mxu0 }
 0x1a2   : > { %v3900_v18 = vpop.f32.mrb[16].mxu1  ;;  %v3925_v57 = vadd.f32 %v3924_v35, %v2908_v24  ;;  %v3893_v40 = vpop.f32.mrb[2].mxu0 }
 0x1a3   : > { %2989 = vst [vmem:[%s5563_s21 + $0x10] sm:$0xff] %v3923_v61  ;;  %v3940_v45 = vadd.f32 %v3939_v29, %v3900_v18  ;;  %v2940_v4 = vpop.f32.mrb[17].mxu1  ;;  %v3927_v36 = vadd.f32 %v3926_v26, %v3893_v40  ;;  %v2911_v3 = vpop.f32.mrb[3].mxu0 }
 0x1a4   : > { %2987 = vst [vmem:[%s5563_s21] sm:$0xff] %v3925_v57  ;;  %v3943_v11 = vadd.f32 %v3942_v9, %v2940_v4  ;;  %v3901_v5 = vpop.f32.mrb[18].mxu1  ;;  %v3929_v60 = vadd.f32 %v3928_v2, %v2911_v3 }
 0x1a5   : > { %2997 = vst [vmem:[%s5563_s21 + $0x50] sm:$0xff] %v3940_v45  ;;  %2990 = vst [vmem:[%s5563_s21 + $0x18] sm:$0xff] %v3927_v36  ;;  %v3946_v10 = vadd.f32 %v3945_v58, %v3901_v5  ;;  %v2943_v22 = vpop.f32.mrb[19].mxu1 }
 0x1a6   : > { %2995 = vst [vmem:[%s5563_s21 + $0x40] sm:$0xff] %v3943_v11  ;;  %2988 = vst [vmem:[%s5563_s21 + $0x8] sm:$0xff] %v3929_v60  ;;  %v3949_v6 = vadd.f32 %v3948_v51, %v2943_v22 }
 0x1a7   : > { %2998 = vst [vmem:[%s5563_s21 + $0x58] sm:$0xff] %v3946_v10 }
 0x1a8   : > { %2996 = vst [vmem:[%s5563_s21 + $0x48] sm:$0xff] %v3949_v6  ;;  %v3896_v34 = vpop.f32.mrb[4].mxu0 }
 0x1a9   : > { %v3931_v48 = vadd.f32 %v3930_v27, %v3896_v34  ;;  %v2924_v23 = vpop.f32.mrb[5].mxu0 }
 0x1aa   : > { %v3904_v17 = vpop.f32.mrb[20].mxu1  ;;  %v3933_v49 = vadd.f32 %v3932_v46, %v2924_v23  ;;  %v3897_v54 = vpop.f32.mrb[6].mxu0 }
 0x1ab   : > { %2993 = vst [vmem:[%s5563_s21 + $0x30] sm:$0xff] %v3931_v48  ;;  %v3952_v63 = vadd.f32 %v3951_v19, %v3904_v17  ;;  %v2956_v55 = vpop.f32.mrb[21].mxu1  ;;  %v3935_v44 = vadd.f32 %v3934_v56, %v3897_v54  ;;  %v2927_v41 = vpop.f32.mrb[7].mxu0 }
 0x1ac   : > { %2991 = vst [vmem:[%s5563_s21 + $0x20] sm:$0xff] %v3933_v49  ;;  %v3955_v39 = vadd.f32 %v3954_v28, %v2956_v55  ;;  %v3905_v53 = vpop.f32.mrb[22].mxu1  ;;  %v3937_v12 = vadd.f32 %v3936_v14, %v2927_v41 }
 0x1ad   : > { %3001 = vst [vmem:[%s5563_s21 + $0x70] sm:$0xff] %v3952_v63  ;;  %2994 = vst [vmem:[%s5563_s21 + $0x38] sm:$0xff] %v3935_v44  ;;  %v3958_v62 = vadd.f32 %v3957_v38, %v3905_v53  ;;  %v2959_v59 = vpop.f32.mrb[23].mxu1 }
 0x1ae   : > { %2999 = vst [vmem:[%s5563_s21 + $0x60] sm:$0xff] %v3955_v39  ;;  %2992 = vst [vmem:[%s5563_s21 + $0x28] sm:$0xff] %v3937_v12  ;;  %v3961_v16 = vadd.f32 %v3960_v31, %v2959_v59 }
 0x1af   : > { %3002 = vst [vmem:[%s5563_s21 + $0x78] sm:$0xff] %v3958_v62 }
 0x1b0   : > { %3000 = vst [vmem:[%s5563_s21 + $0x68] sm:$0xff] %v3961_v16 }
 0x1b1   : > { %4255 = shalt.err (!%p4252_p6)
}
 0x1b2   : > { %s4256_s11 = scalar_lea.hbm %s5591_s6, 2048  ;;  %s4260_s24 = scalar_lea.hbm %s5656_s3, 8192 }
 0x1b3   : > { %p4257_p7 = scmp.ne.s32.totalorder %s5591_s6, %s4256_s11  ;;  %p4261_p11 = scmp.lt.u32.totalorder %s5591_s6, %s5656_s3 }
 0x1b4   : > { %p4262_p12 = scmp.lt.u32.totalorder %s4260_s24, %s4256_s11  ;;  %p4264_p0 = scmp.lt.u32.totalorder %s4256_s11, %s5591_s6 }
 0x1b5   : > { %p4258_p9 = pnand %p4257_p7, %p4412_p3 }
 0x1b6   : > { %p4263_p13 = por %p4262_p12, %p4261_p11 }
 0x1b7   : > { %p4259_p10 = pneg %p4258_p9 }
 0x1b8   : > { %p4265_p1 = por %p4264_p0, %p4263_p13 }
 0x1ba   : > { %p4266_p2 = pnand %p4265_p1, %p4259_p10 }
 0x1bc   : > { %4269 = shalt.err (!%p4266_p2)
}
 0x1bd   : > { %s4339_s15 = smov 128   ;;  %s4340_s4 = smov 8  }
 0x1be   : > { %4067 = dma.vmem_to_hbm [thread:$0]  (%p4412_p3), %s5593_s16, 2048, %s5591_s6, %s5601_s7, %s4339_s15, %s4339_s15, %s4340_s4  }
 0x1bf PF: > { %p4073_p4 = scmp.ge.s32.totalorder %s4336_s19, 2  ;;  %s3035_s5 = sand.u32 1, %s4308_s12  }
 0x1c0   : > { %s3036_s8 = scalar_lea.sflag [#allocation3], %s3035_s5 }
 0x1c1   : > { %p4070_p5 = pnand %p4073_p4, %p4421_p8 }
 0x1c3   : > { %4303 = dma.done.wait (!%p4070_p5), %s3036_s8, 2048  }
 0x1c4   : > { %4305 = vsyncadd (!%p4070_p5), %s3036_s8, 4294965248  ;;  %s16_s19 = sadd.s32 1, %s4336_s19   ;;  %s5744_s12 = smov %s4312_s13 }
 0x1c5   : > { %p13_p6 = scmp.ge.s32.totalorder %s16_s19, 6   ;;  %s5745_s13 = smov %s4316_s14 }
 0x1c6   : > { %s5746_s14 = smov %s4430_s30  ;;  %s5747_s15 = smov %s4328_s17 }
 0x1c7   : > { %s5748_s16 = smov %s4332_s18  ;;  %s5749_s17 = smov %s5752_s22 }
 0x1c8   : > { %s5750_s18 = smov %s5756_s23  ;;  %15 = sbr.rel (!%p13_p6) target bundleno = 5 (0x5), region = 78 }
 0x1cf   :  { %3041 = vsyncpa [#allocation3], 1 }
 0x1d0   :  { %3043 = vsyncpa [#allocation3 + $0x1], 1 }

</bundles_post_ra>
